<compile_context>
chip_gen: v6e
topology: v6e:2x2x1
jax: 0.10.0
libtpu: 0.0.40
codegen_flags: <defaults>
</compile_context>

<pallas_src>
import functools

import jax
import jax.numpy as jnp
from jax import lax
from jax.experimental import pallas as pl
from jax.experimental.pallas import tpu as pltpu


def cross_attention_kernel(x1_ref, x2_ref, wq_ref, wk_ref, wv_ref, wo_ref, bo_ref,
                           out_ref, o_all, *, num_heads, k_dim, v_dim):
    bb, s1, _ = x1_ref.shape
    _, s2, _ = x2_ref.shape
    d_out = out_ref.shape[-1]

    # Fold the batch block into M and cast MXU operands to bf16 (f32 accumulation).
    x1 = x1_ref[...].astype(jnp.bfloat16).reshape(bb * s1, -1)   # (bb*S1, D1)
    x2 = x2_ref[...].astype(jnp.bfloat16).reshape(bb * s2, -1)   # (bb*S2, D2)

    # 3 packed, lane-dense projections for all heads (attention scale folded into Wq).
    q_all = jnp.dot(x1, wq_ref[...], preferred_element_type=jnp.float32).astype(jnp.bfloat16)
    k_all = jnp.dot(x2, wk_ref[...], preferred_element_type=jnp.float32).astype(jnp.bfloat16)
    v_all = jnp.dot(x2, wv_ref[...], preferred_element_type=jnp.float32).astype(jnp.bfloat16)

    for b in range(bb):                            # static unroll; bb is 1 or B (tiny)
        qb = q_all[b * s1:(b + 1) * s1]
        kb = k_all[b * s2:(b + 1) * s2]
        vb = v_all[b * s2:(b + 1) * s2]
        for h in range(num_heads):                 # static 16-lane slices: cheap vreg selects
            qh = qb[:, h * k_dim:(h + 1) * k_dim]
            kh = kb[:, h * k_dim:(h + 1) * k_dim]
            vh = vb[:, h * v_dim:(h + 1) * v_dim]

            # Scores: contract over K without materializing kh.T (no XLU transpose).
            s = lax.dot_general(qh, kh, (((1,), (1,)), ((), ())),
                                preferred_element_type=jnp.float32)        # (S1, S2)

            # Numerically-stable softmax in f32; reciprocal on the (idle) EUP slot.
            s = s - jnp.max(s, axis=-1, keepdims=True)
            e = jnp.exp(s)
            p = e * pl.reciprocal(jnp.sum(e, axis=-1, keepdims=True), approx=True)

            oh = jnp.dot(p.astype(jnp.bfloat16), vh, preferred_element_type=jnp.float32)
            # Lane-offset store into the (bb*S1, H*V) scratch — no concat, store slot is idle.
            o_all[b * s1:(b + 1) * s1, h * v_dim:(h + 1) * v_dim] = oh.astype(jnp.bfloat16)

    # One deep (contraction depth H*V=80) output projection instead of 5 shallow ones.
    out = jnp.dot(o_all[...], wo_ref[...], preferred_element_type=jnp.float32)
    out = out + bo_ref[...]
    out_ref[...] = out.reshape(bb, s1, d_out).astype(out_ref.dtype)


def prepare_cross_attention_params(wq, wk, wv, wo, bo, *, k_dim):
    """One-time parameter prep (hoisted out of the forward path): fold 1/sqrt(k_dim)
    into Wq and cast the MXU weight operands to bf16.  Weights stay packed/lane-dense:
    (D1, H*K), (D2, H*K), (D2, H*V), (H*V, D_out); weights stored (in_features, out_features)."""
    return ((wq * (k_dim ** -0.5)).astype(jnp.bfloat16),
            wk.astype(jnp.bfloat16),
            wv.astype(jnp.bfloat16),
            wo.astype(jnp.bfloat16),
            bo.reshape(1, -1).astype(jnp.float32))


def _default_batch_block(batch):
    """Batches per grid step: 1 on dual-TensorCore v7x (so the 'parallel' grid axis
    shards across the two TCs); otherwise collapse the batch into one grid step
    (single-TC v5e/v6e: ~0.35us per grid step is a big slice of this tiny kernel)."""
    try:
        kind = jax.devices()[0].device_kind.lower()
    except Exception:
        kind = ""
    if (("v7" in kind) or ("tpu7" in kind)) and batch % 2 == 0:
        return 1
    return batch


def cross_attention(x1, x2, params, *, num_heads, k_dim, v_dim, batch_block=None):
    """x1: (B,S1,D1), x2: (B,S2,D2); params from prepare_cross_attention_params."""
    wq_p, wk_p, wv_p, wo_p, bo_p = params
    B, S1, D1 = x1.shape
    _, S2, D2 = x2.shape
    D_out = wo_p.shape[-1]

    bb = _default_batch_block(B) if batch_block is None else batch_block
    assert B % bb == 0
    steps = B // bb

    kernel = functools.partial(cross_attention_kernel,
                               num_heads=num_heads, k_dim=k_dim, v_dim=v_dim)

    # Working set is tiny (<0.5 MiB padded), so no tiling pressure even on v7x's 64 MiB
    # VMEM; if S1/S2/D scale up, re-derive block sizes (inputs are double-buffered).
    return pl.pallas_call(
        kernel,
        out_shape=jax.ShapeDtypeStruct((B, S1, D_out), x1.dtype),
        grid=(steps,),
        in_specs=[
            pl.BlockSpec((bb, S1, D1), lambda i: (i, 0, 0)),    # x1 batch block
            pl.BlockSpec((bb, S2, D2), lambda i: (i, 0, 0)),    # x2 batch block
            pl.BlockSpec(wq_p.shape, lambda i: (0, 0)),         # packed Wq (scale folded)
            pl.BlockSpec(wk_p.shape, lambda i: (0, 0)),         # packed Wk
            pl.BlockSpec(wv_p.shape, lambda i: (0, 0)),         # packed Wv
            pl.BlockSpec(wo_p.shape, lambda i: (0, 0)),         # packed Wo
            pl.BlockSpec(bo_p.shape, lambda i: (0, 0)),         # bias_o
        ],
        out_specs=pl.BlockSpec((bb, S1, D_out), lambda i: (i, 0, 0)),
        scratch_shapes=[pltpu.VMEM((bb * S1, num_heads * v_dim), jnp.bfloat16)],
        compiler_params=pltpu.CompilerParams(dimension_semantics=("parallel",)),
    )(x1, x2, wq_p, wk_p, wv_p, wo_p, bo_p)


def reference_cross_attention(x1, x2, wq, wk, wv, wo, bo, *, num_heads, k_dim, v_dim):
    """Pure-JAX f32 reference mirroring the PyTorch forward (mask=None)."""
    B, S1, _ = x1.shape
    S2 = x2.shape[1]
    q = (x1 @ wq).reshape(B, S1, num_heads, k_dim).transpose(0, 2, 1, 3)     # (B,H,S1,K)
    k = (x2 @ wk).reshape(B, S2, num_heads, k_dim).transpose(0, 2, 3, 1)     # (B,H,K,S2)
    v = (x2 @ wv).reshape(B, S2, num_heads, v_dim).transpose(0, 2, 1, 3)     # (B,H,S2,V)
    attn = jnp.einsum('bhqk,bhks->bhqs', q, k) / (k_dim ** 0.5)
    attn = jax.nn.softmax(attn, axis=-1)
    out = jnp.einsum('bhqs,bhsv->bhqv', attn, v).transpose(0, 2, 1, 3).reshape(B, S1, -1)
    return out @ wo + bo


if __name__ == "__main__":
    # Module hyper-parameters (small, consistent with the nn.Module __init__).
    in_dim1, in_dim2 = 32, 24
    k_dim, v_dim = 16, 16
    num_heads = 5
    B, S1, S2 = 2, 8, 12

    key = jax.random.PRNGKey(0)
    k_x1, k_x2, k_q, k_k, k_v, k_o, k_b = jax.random.split(key, 7)

    x1 = jax.random.normal(k_x1, (B, S1, in_dim1), dtype=jnp.float32)
    x2 = jax.random.normal(k_x2, (B, S2, in_dim2), dtype=jnp.float32)

    # Deterministic parameter init, stored as (in_features, out_features).
    wq = jax.random.normal(k_q, (in_dim1, k_dim * num_heads), dtype=jnp.float32) * 0.1
    wk = jax.random.normal(k_k, (in_dim2, k_dim * num_heads), dtype=jnp.float32) * 0.1
    wv = jax.random.normal(k_v, (in_dim2, v_dim * num_heads), dtype=jnp.float32) * 0.1
    wo = jax.random.normal(k_o, (v_dim * num_heads, in_dim1), dtype=jnp.float32) * 0.1
    bo = jax.random.normal(k_b, (in_dim1,), dtype=jnp.float32) * 0.1

    # One-time parameter re-layout (scale fold + bf16 cast), hoisted off the hot path.
    params = prepare_cross_attention_params(wq, wk, wv, wo, bo, k_dim=k_dim)

    out = cross_attention(x1, x2, params,
                          num_heads=num_heads, k_dim=k_dim, v_dim=v_dim)
    out = jax.block_until_ready(out)

    ref = reference_cross_attention(x1, x2, wq, wk, wv, wo, bo,
                                    num_heads=num_heads, k_dim=k_dim, v_dim=v_dim)
    assert out.shape == (B, S1, in_dim1)
    # Tolerance absorbs bf16 MXU operands (~0.4% relative per operand) and the EUP
    # approximate-reciprocal softmax normalization (~1e-3 relative); any structural
    # bug would blow far past this.
    assert jnp.allclose(out, ref, atol=2e-2, rtol=2e-2), "Pallas output mismatch vs reference"

    print("KERNEL_OK")
</pallas_src>

<mosaic_0001>
module attributes {stable_mosaic.version = 11 : i64} {
  func.func @cross_attention_kernel(%arg0: i32, %arg1: memref<2x8x32xf32, #tpu.memory_space<vmem>>, %arg2: memref<2x12x24xf32, #tpu.memory_space<vmem>>, %arg3: memref<32x80xbf16, #tpu.memory_space<vmem>>, %arg4: memref<24x80xbf16, #tpu.memory_space<vmem>>, %arg5: memref<24x80xbf16, #tpu.memory_space<vmem>>, %arg6: memref<80x32xbf16, #tpu.memory_space<vmem>>, %arg7: memref<1x32xf32, #tpu.memory_space<vmem>>, %arg8: memref<2x8x32xf32, #tpu.memory_space<vmem>>, %arg9: memref<16x80xbf16, #tpu.memory_space<vmem>>) attributes {dimension_semantics = [#tpu.dimension_semantics<parallel>], iteration_bounds = array<i64: 1>, scalar_prefetch = 0 : i64, scratch_operands = 1 : i64, tpu.core_type = #tpu.core_type<tc>, window_params = [{transform_indices = @transform_0, window_bounds = array<i64: 2, 8, 32>}, {transform_indices = @transform_1, window_bounds = array<i64: 2, 12, 24>}, {pipeline_mode = #tpu.pipeline_mode<synchronous>, transform_indices = @transform_2, window_bounds = array<i64: 32, 80>}, {pipeline_mode = #tpu.pipeline_mode<synchronous>, transform_indices = @transform_3, window_bounds = array<i64: 24, 80>}, {pipeline_mode = #tpu.pipeline_mode<synchronous>, transform_indices = @transform_4, window_bounds = array<i64: 24, 80>}, {pipeline_mode = #tpu.pipeline_mode<synchronous>, transform_indices = @transform_5, window_bounds = array<i64: 80, 32>}, {pipeline_mode = #tpu.pipeline_mode<synchronous>, transform_indices = @transform_6, window_bounds = array<i64: 1, 32>}, {transform_indices = @transform_7, window_bounds = array<i64: 2, 8, 32>}]} {
    %c0 = arith.constant 0 : index
    %c0_0 = arith.constant 0 : index
    %c0_1 = arith.constant 0 : index
    %0 = vector.load %arg1[%c0, %c0_0, %c0_1] : memref<2x8x32xf32, #tpu.memory_space<vmem>>, vector<2x8x32xf32>
    %1 = arith.truncf %0 : vector<2x8x32xf32> to vector<2x8x32xbf16>
    %2 = vector.shape_cast %1 : vector<2x8x32xbf16> to vector<16x32xbf16>
    %c0_2 = arith.constant 0 : index
    %c0_3 = arith.constant 0 : index
    %c0_4 = arith.constant 0 : index
    %3 = vector.load %arg2[%c0_2, %c0_3, %c0_4] : memref<2x12x24xf32, #tpu.memory_space<vmem>>, vector<2x12x24xf32>
    %4 = arith.truncf %3 : vector<2x12x24xf32> to vector<2x12x24xbf16>
    %5 = vector.shape_cast %4 : vector<2x12x24xbf16> to vector<24x24xbf16>
    %c0_5 = arith.constant 0 : index
    %c0_6 = arith.constant 0 : index
    %6 = vector.load %arg3[%c0_5, %c0_6] : memref<32x80xbf16, #tpu.memory_space<vmem>>, vector<32x80xbf16>
    %cst = arith.constant dense<0.000000e+00> : vector<16x80xf32>
    %7 = tpu.matmul %2, %6, %cst {dimension_numbers = #tpu.dot_dimension_numbers<[1], [0], [0], [1], [0, 0, 1, 1], [], []>} : vector<16x32xbf16>, vector<32x80xbf16>, vector<16x80xf32> -> vector<16x80xf32>
    %8 = arith.truncf %7 : vector<16x80xf32> to vector<16x80xbf16>
    %c0_7 = arith.constant 0 : index
    %c0_8 = arith.constant 0 : index
    %9 = vector.load %arg4[%c0_7, %c0_8] : memref<24x80xbf16, #tpu.memory_space<vmem>>, vector<24x80xbf16>
    %cst_9 = arith.constant dense<0.000000e+00> : vector<24x80xf32>
    %10 = tpu.matmul %5, %9, %cst_9 {dimension_numbers = #tpu.dot_dimension_numbers<[1], [0], [0], [1], [0, 0, 1, 1], [], []>} : vector<24x24xbf16>, vector<24x80xbf16>, vector<24x80xf32> -> vector<24x80xf32>
    %11 = arith.truncf %10 : vector<24x80xf32> to vector<24x80xbf16>
    %c0_10 = arith.constant 0 : index
    %c0_11 = arith.constant 0 : index
    %12 = vector.load %arg5[%c0_10, %c0_11] : memref<24x80xbf16, #tpu.memory_space<vmem>>, vector<24x80xbf16>
    %cst_12 = arith.constant dense<0.000000e+00> : vector<24x80xf32>
    %13 = tpu.matmul %5, %12, %cst_12 {dimension_numbers = #tpu.dot_dimension_numbers<[1], [0], [0], [1], [0, 0, 1, 1], [], []>} : vector<24x24xbf16>, vector<24x80xbf16>, vector<24x80xf32> -> vector<24x80xf32>
    %14 = arith.truncf %13 : vector<24x80xf32> to vector<24x80xbf16>
    %15 = vector.extract_strided_slice %8 {offsets = [0, 0], sizes = [8, 80], strides = [1, 1]} : vector<16x80xbf16> to vector<8x80xbf16>
    %16 = vector.extract_strided_slice %11 {offsets = [0, 0], sizes = [12, 80], strides = [1, 1]} : vector<24x80xbf16> to vector<12x80xbf16>
    %17 = vector.extract_strided_slice %14 {offsets = [0, 0], sizes = [12, 80], strides = [1, 1]} : vector<24x80xbf16> to vector<12x80xbf16>
    %18 = vector.extract_strided_slice %15 {offsets = [0, 0], sizes = [8, 16], strides = [1, 1]} : vector<8x80xbf16> to vector<8x16xbf16>
    %19 = vector.extract_strided_slice %16 {offsets = [0, 0], sizes = [12, 16], strides = [1, 1]} : vector<12x80xbf16> to vector<12x16xbf16>
    %20 = vector.extract_strided_slice %17 {offsets = [0, 0], sizes = [12, 16], strides = [1, 1]} : vector<12x80xbf16> to vector<12x16xbf16>
    %cst_13 = arith.constant dense<0.000000e+00> : vector<8x12xf32>
    %21 = tpu.matmul %18, %19, %cst_13 {dimension_numbers = #tpu.dot_dimension_numbers<[1], [1], [0], [0], [0, 0, 1, 0], [], []>} : vector<8x16xbf16>, vector<12x16xbf16>, vector<8x12xf32> -> vector<8x12xf32>
    %cst_14 = arith.constant dense<0xFF800000> : vector<8xf32>
    %22 = vector.multi_reduction <maximumf>, %21, %cst_14 [1] : vector<8x12xf32> to vector<8xf32>
    %23 = vector.shape_cast %22 : vector<8xf32> to vector<8x1xf32>
    %24 = vector.broadcast %23 : vector<8x1xf32> to vector<8x12xf32>
    %25 = arith.subf %21, %24 : vector<8x12xf32>
    %26 = math.exp %25 : vector<8x12xf32>
    %cst_15 = arith.constant dense<0.000000e+00> : vector<8xf32>
    %27 = vector.multi_reduction <add>, %26, %cst_15 [1] : vector<8x12xf32> to vector<8xf32>
    %28 = vector.shape_cast %27 : vector<8xf32> to vector<8x1xf32>
    %29 = tpu.reciprocal %28 {approx = true} : vector<8x1xf32> -> vector<8x1xf32>
    %30 = vector.broadcast %29 : vector<8x1xf32> to vector<8x12xf32>
    %31 = arith.mulf %26, %30 : vector<8x12xf32>
    %32 = arith.truncf %31 : vector<8x12xf32> to vector<8x12xbf16>
    %cst_16 = arith.constant dense<0.000000e+00> : vector<8x16xf32>
    %33 = tpu.matmul %32, %20, %cst_16 {dimension_numbers = #tpu.dot_dimension_numbers<[1], [0], [0], [1], [0, 0, 1, 1], [], []>} : vector<8x12xbf16>, vector<12x16xbf16>, vector<8x16xf32> -> vector<8x16xf32>
    %34 = arith.truncf %33 : vector<8x16xf32> to vector<8x16xbf16>
    %c0_17 = arith.constant 0 : index
    %c0_18 = arith.constant 0 : index
    %35 = vector.load %arg9[%c0_17, %c0_18] : memref<16x80xbf16, #tpu.memory_space<vmem>>, vector<8x16xbf16>
    tpu.vector_store %arg9[%c0_17, %c0_18], %34 {strides = array<i32>} : memref<16x80xbf16, #tpu.memory_space<vmem>>, vector<8x16xbf16>,
    %36 = vector.extract_strided_slice %15 {offsets = [0, 16], sizes = [8, 16], strides = [1, 1]} : vector<8x80xbf16> to vector<8x16xbf16>
    %37 = vector.extract_strided_slice %16 {offsets = [0, 16], sizes = [12, 16], strides = [1, 1]} : vector<12x80xbf16> to vector<12x16xbf16>
    %38 = vector.extract_strided_slice %17 {offsets = [0, 16], sizes = [12, 16], strides = [1, 1]} : vector<12x80xbf16> to vector<12x16xbf16>
    %cst_19 = arith.constant dense<0.000000e+00> : vector<8x12xf32>
    %39 = tpu.matmul %36, %37, %cst_19 {dimension_numbers = #tpu.dot_dimension_numbers<[1], [1], [0], [0], [0, 0, 1, 0], [], []>} : vector<8x16xbf16>, vector<12x16xbf16>, vector<8x12xf32> -> vector<8x12xf32>
    %cst_20 = arith.constant dense<0xFF800000> : vector<8xf32>
    %40 = vector.multi_reduction <maximumf>, %39, %cst_20 [1] : vector<8x12xf32> to vector<8xf32>
    %41 = vector.shape_cast %40 : vector<8xf32> to vector<8x1xf32>
    %42 = vector.broadcast %41 : vector<8x1xf32> to vector<8x12xf32>
    %43 = arith.subf %39, %42 : vector<8x12xf32>
    %44 = math.exp %43 : vector<8x12xf32>
    %cst_21 = arith.constant dense<0.000000e+00> : vector<8xf32>
    %45 = vector.multi_reduction <add>, %44, %cst_21 [1] : vector<8x12xf32> to vector<8xf32>
    %46 = vector.shape_cast %45 : vector<8xf32> to vector<8x1xf32>
    %47 = tpu.reciprocal %46 {approx = true} : vector<8x1xf32> -> vector<8x1xf32>
    %48 = vector.broadcast %47 : vector<8x1xf32> to vector<8x12xf32>
    %49 = arith.mulf %44, %48 : vector<8x12xf32>
    %50 = arith.truncf %49 : vector<8x12xf32> to vector<8x12xbf16>
    %cst_22 = arith.constant dense<0.000000e+00> : vector<8x16xf32>
    %51 = tpu.matmul %50, %38, %cst_22 {dimension_numbers = #tpu.dot_dimension_numbers<[1], [0], [0], [1], [0, 0, 1, 1], [], []>} : vector<8x12xbf16>, vector<12x16xbf16>, vector<8x16xf32> -> vector<8x16xf32>
    %52 = arith.truncf %51 : vector<8x16xf32> to vector<8x16xbf16>
    %c0_23 = arith.constant 0 : index
    %c16 = arith.constant 16 : index
    %53 = vector.load %arg9[%c0_23, %c16] : memref<16x80xbf16, #tpu.memory_space<vmem>>, vector<8x16xbf16>
    tpu.vector_store %arg9[%c0_23, %c16], %52 {strides = array<i32>} : memref<16x80xbf16, #tpu.memory_space<vmem>>, vector<8x16xbf16>,
    %54 = vector.extract_strided_slice %15 {offsets = [0, 32], sizes = [8, 16], strides = [1, 1]} : vector<8x80xbf16> to vector<8x16xbf16>
    %55 = vector.extract_strided_slice %16 {offsets = [0, 32], sizes = [12, 16], strides = [1, 1]} : vector<12x80xbf16> to vector<12x16xbf16>
    %56 = vector.extract_strided_slice %17 {offsets = [0, 32], sizes = [12, 16], strides = [1, 1]} : vector<12x80xbf16> to vector<12x16xbf16>
    %cst_24 = arith.constant dense<0.000000e+00> : vector<8x12xf32>
    %57 = tpu.matmul %54, %55, %cst_24 {dimension_numbers = #tpu.dot_dimension_numbers<[1], [1], [0], [0], [0, 0, 1, 0], [], []>} : vector<8x16xbf16>, vector<12x16xbf16>, vector<8x12xf32> -> vector<8x12xf32>
    %cst_25 = arith.constant dense<0xFF800000> : vector<8xf32>
    %58 = vector.multi_reduction <maximumf>, %57, %cst_25 [1] : vector<8x12xf32> to vector<8xf32>
    %59 = vector.shape_cast %58 : vector<8xf32> to vector<8x1xf32>
    %60 = vector.broadcast %59 : vector<8x1xf32> to vector<8x12xf32>
    %61 = arith.subf %57, %60 : vector<8x12xf32>
    %62 = math.exp %61 : vector<8x12xf32>
    %cst_26 = arith.constant dense<0.000000e+00> : vector<8xf32>
    %63 = vector.multi_reduction <add>, %62, %cst_26 [1] : vector<8x12xf32> to vector<8xf32>
    %64 = vector.shape_cast %63 : vector<8xf32> to vector<8x1xf32>
    %65 = tpu.reciprocal %64 {approx = true} : vector<8x1xf32> -> vector<8x1xf32>
    %66 = vector.broadcast %65 : vector<8x1xf32> to vector<8x12xf32>
    %67 = arith.mulf %62, %66 : vector<8x12xf32>
    %68 = arith.truncf %67 : vector<8x12xf32> to vector<8x12xbf16>
    %cst_27 = arith.constant dense<0.000000e+00> : vector<8x16xf32>
    %69 = tpu.matmul %68, %56, %cst_27 {dimension_numbers = #tpu.dot_dimension_numbers<[1], [0], [0], [1], [0, 0, 1, 1], [], []>} : vector<8x12xbf16>, vector<12x16xbf16>, vector<8x16xf32> -> vector<8x16xf32>
    %70 = arith.truncf %69 : vector<8x16xf32> to vector<8x16xbf16>
    %c0_28 = arith.constant 0 : index
    %c32 = arith.constant 32 : index
    %71 = vector.load %arg9[%c0_28, %c32] : memref<16x80xbf16, #tpu.memory_space<vmem>>, vector<8x16xbf16>
    tpu.vector_store %arg9[%c0_28, %c32], %70 {strides = array<i32>} : memref<16x80xbf16, #tpu.memory_space<vmem>>, vector<8x16xbf16>,
    %72 = vector.extract_strided_slice %15 {offsets = [0, 48], sizes = [8, 16], strides = [1, 1]} : vector<8x80xbf16> to vector<8x16xbf16>
    %73 = vector.extract_strided_slice %16 {offsets = [0, 48], sizes = [12, 16], strides = [1, 1]} : vector<12x80xbf16> to vector<12x16xbf16>
    %74 = vector.extract_strided_slice %17 {offsets = [0, 48], sizes = [12, 16], strides = [1, 1]} : vector<12x80xbf16> to vector<12x16xbf16>
    %cst_29 = arith.constant dense<0.000000e+00> : vector<8x12xf32>
    %75 = tpu.matmul %72, %73, %cst_29 {dimension_numbers = #tpu.dot_dimension_numbers<[1], [1], [0], [0], [0, 0, 1, 0], [], []>} : vector<8x16xbf16>, vector<12x16xbf16>, vector<8x12xf32> -> vector<8x12xf32>
    %cst_30 = arith.constant dense<0xFF800000> : vector<8xf32>
    %76 = vector.multi_reduction <maximumf>, %75, %cst_30 [1] : vector<8x12xf32> to vector<8xf32>
    %77 = vector.shape_cast %76 : vector<8xf32> to vector<8x1xf32>
    %78 = vector.broadcast %77 : vector<8x1xf32> to vector<8x12xf32>
    %79 = arith.subf %75, %78 : vector<8x12xf32>
    %80 = math.exp %79 : vector<8x12xf32>
    %cst_31 = arith.constant dense<0.000000e+00> : vector<8xf32>
    %81 = vector.multi_reduction <add>, %80, %cst_31 [1] : vector<8x12xf32> to vector<8xf32>
    %82 = vector.shape_cast %81 : vector<8xf32> to vector<8x1xf32>
    %83 = tpu.reciprocal %82 {approx = true} : vector<8x1xf32> -> vector<8x1xf32>
    %84 = vector.broadcast %83 : vector<8x1xf32> to vector<8x12xf32>
    %85 = arith.mulf %80, %84 : vector<8x12xf32>
    %86 = arith.truncf %85 : vector<8x12xf32> to vector<8x12xbf16>
    %cst_32 = arith.constant dense<0.000000e+00> : vector<8x16xf32>
    %87 = tpu.matmul %86, %74, %cst_32 {dimension_numbers = #tpu.dot_dimension_numbers<[1], [0], [0], [1], [0, 0, 1, 1], [], []>} : vector<8x12xbf16>, vector<12x16xbf16>, vector<8x16xf32> -> vector<8x16xf32>
    %88 = arith.truncf %87 : vector<8x16xf32> to vector<8x16xbf16>
    %c0_33 = arith.constant 0 : index
    %c48 = arith.constant 48 : index
    %89 = vector.load %arg9[%c0_33, %c48] : memref<16x80xbf16, #tpu.memory_space<vmem>>, vector<8x16xbf16>
    tpu.vector_store %arg9[%c0_33, %c48], %88 {strides = array<i32>} : memref<16x80xbf16, #tpu.memory_space<vmem>>, vector<8x16xbf16>,
    %90 = vector.extract_strided_slice %15 {offsets = [0, 64], sizes = [8, 16], strides = [1, 1]} : vector<8x80xbf16> to vector<8x16xbf16>
    %91 = vector.extract_strided_slice %16 {offsets = [0, 64], sizes = [12, 16], strides = [1, 1]} : vector<12x80xbf16> to vector<12x16xbf16>
    %92 = vector.extract_strided_slice %17 {offsets = [0, 64], sizes = [12, 16], strides = [1, 1]} : vector<12x80xbf16> to vector<12x16xbf16>
    %cst_34 = arith.constant dense<0.000000e+00> : vector<8x12xf32>
    %93 = tpu.matmul %90, %91, %cst_34 {dimension_numbers = #tpu.dot_dimension_numbers<[1], [1], [0], [0], [0, 0, 1, 0], [], []>} : vector<8x16xbf16>, vector<12x16xbf16>, vector<8x12xf32> -> vector<8x12xf32>
    %cst_35 = arith.constant dense<0xFF800000> : vector<8xf32>
    %94 = vector.multi_reduction <maximumf>, %93, %cst_35 [1] : vector<8x12xf32> to vector<8xf32>
    %95 = vector.shape_cast %94 : vector<8xf32> to vector<8x1xf32>
    %96 = vector.broadcast %95 : vector<8x1xf32> to vector<8x12xf32>
    %97 = arith.subf %93, %96 : vector<8x12xf32>
    %98 = math.exp %97 : vector<8x12xf32>
    %cst_36 = arith.constant dense<0.000000e+00> : vector<8xf32>
    %99 = vector.multi_reduction <add>, %98, %cst_36 [1] : vector<8x12xf32> to vector<8xf32>
    %100 = vector.shape_cast %99 : vector<8xf32> to vector<8x1xf32>
    %101 = tpu.reciprocal %100 {approx = true} : vector<8x1xf32> -> vector<8x1xf32>
    %102 = vector.broadcast %101 : vector<8x1xf32> to vector<8x12xf32>
    %103 = arith.mulf %98, %102 : vector<8x12xf32>
    %104 = arith.truncf %103 : vector<8x12xf32> to vector<8x12xbf16>
    %cst_37 = arith.constant dense<0.000000e+00> : vector<8x16xf32>
    %105 = tpu.matmul %104, %92, %cst_37 {dimension_numbers = #tpu.dot_dimension_numbers<[1], [0], [0], [1], [0, 0, 1, 1], [], []>} : vector<8x12xbf16>, vector<12x16xbf16>, vector<8x16xf32> -> vector<8x16xf32>
    %106 = arith.truncf %105 : vector<8x16xf32> to vector<8x16xbf16>
    %c0_38 = arith.constant 0 : index
    %c64 = arith.constant 64 : index
    %107 = vector.load %arg9[%c0_38, %c64] : memref<16x80xbf16, #tpu.memory_space<vmem>>, vector<8x16xbf16>
    tpu.vector_store %arg9[%c0_38, %c64], %106 {strides = array<i32>} : memref<16x80xbf16, #tpu.memory_space<vmem>>, vector<8x16xbf16>,
    %108 = vector.extract_strided_slice %8 {offsets = [8, 0], sizes = [8, 80], strides = [1, 1]} : vector<16x80xbf16> to vector<8x80xbf16>
    %109 = vector.extract_strided_slice %11 {offsets = [12, 0], sizes = [12, 80], strides = [1, 1]} : vector<24x80xbf16> to vector<12x80xbf16>
    %110 = vector.extract_strided_slice %14 {offsets = [12, 0], sizes = [12, 80], strides = [1, 1]} : vector<24x80xbf16> to vector<12x80xbf16>
    %111 = vector.extract_strided_slice %108 {offsets = [0, 0], sizes = [8, 16], strides = [1, 1]} : vector<8x80xbf16> to vector<8x16xbf16>
    %112 = vector.extract_strided_slice %109 {offsets = [0, 0], sizes = [12, 16], strides = [1, 1]} : vector<12x80xbf16> to vector<12x16xbf16>
    %113 = vector.extract_strided_slice %110 {offsets = [0, 0], sizes = [12, 16], strides = [1, 1]} : vector<12x80xbf16> to vector<12x16xbf16>
    %cst_39 = arith.constant dense<0.000000e+00> : vector<8x12xf32>
    %114 = tpu.matmul %111, %112, %cst_39 {dimension_numbers = #tpu.dot_dimension_numbers<[1], [1], [0], [0], [0, 0, 1, 0], [], []>} : vector<8x16xbf16>, vector<12x16xbf16>, vector<8x12xf32> -> vector<8x12xf32>
    %cst_40 = arith.constant dense<0xFF800000> : vector<8xf32>
    %115 = vector.multi_reduction <maximumf>, %114, %cst_40 [1] : vector<8x12xf32> to vector<8xf32>
    %116 = vector.shape_cast %115 : vector<8xf32> to vector<8x1xf32>
    %117 = vector.broadcast %116 : vector<8x1xf32> to vector<8x12xf32>
    %118 = arith.subf %114, %117 : vector<8x12xf32>
    %119 = math.exp %118 : vector<8x12xf32>
    %cst_41 = arith.constant dense<0.000000e+00> : vector<8xf32>
    %120 = vector.multi_reduction <add>, %119, %cst_41 [1] : vector<8x12xf32> to vector<8xf32>
    %121 = vector.shape_cast %120 : vector<8xf32> to vector<8x1xf32>
    %122 = tpu.reciprocal %121 {approx = true} : vector<8x1xf32> -> vector<8x1xf32>
    %123 = vector.broadcast %122 : vector<8x1xf32> to vector<8x12xf32>
    %124 = arith.mulf %119, %123 : vector<8x12xf32>
    %125 = arith.truncf %124 : vector<8x12xf32> to vector<8x12xbf16>
    %cst_42 = arith.constant dense<0.000000e+00> : vector<8x16xf32>
    %126 = tpu.matmul %125, %113, %cst_42 {dimension_numbers = #tpu.dot_dimension_numbers<[1], [0], [0], [1], [0, 0, 1, 1], [], []>} : vector<8x12xbf16>, vector<12x16xbf16>, vector<8x16xf32> -> vector<8x16xf32>
    %127 = arith.truncf %126 : vector<8x16xf32> to vector<8x16xbf16>
    %c8 = arith.constant 8 : index
    %c0_43 = arith.constant 0 : index
    %128 = vector.load %arg9[%c8, %c0_43] : memref<16x80xbf16, #tpu.memory_space<vmem>>, vector<8x16xbf16>
    tpu.vector_store %arg9[%c8, %c0_43], %127 {strides = array<i32>} : memref<16x80xbf16, #tpu.memory_space<vmem>>, vector<8x16xbf16>,
    %129 = vector.extract_strided_slice %108 {offsets = [0, 16], sizes = [8, 16], strides = [1, 1]} : vector<8x80xbf16> to vector<8x16xbf16>
    %130 = vector.extract_strided_slice %109 {offsets = [0, 16], sizes = [12, 16], strides = [1, 1]} : vector<12x80xbf16> to vector<12x16xbf16>
    %131 = vector.extract_strided_slice %110 {offsets = [0, 16], sizes = [12, 16], strides = [1, 1]} : vector<12x80xbf16> to vector<12x16xbf16>
    %cst_44 = arith.constant dense<0.000000e+00> : vector<8x12xf32>
    %132 = tpu.matmul %129, %130, %cst_44 {dimension_numbers = #tpu.dot_dimension_numbers<[1], [1], [0], [0], [0, 0, 1, 0], [], []>} : vector<8x16xbf16>, vector<12x16xbf16>, vector<8x12xf32> -> vector<8x12xf32>
    %cst_45 = arith.constant dense<0xFF800000> : vector<8xf32>
    %133 = vector.multi_reduction <maximumf>, %132, %cst_45 [1] : vector<8x12xf32> to vector<8xf32>
    %134 = vector.shape_cast %133 : vector<8xf32> to vector<8x1xf32>
    %135 = vector.broadcast %134 : vector<8x1xf32> to vector<8x12xf32>
    %136 = arith.subf %132, %135 : vector<8x12xf32>
    %137 = math.exp %136 : vector<8x12xf32>
    %cst_46 = arith.constant dense<0.000000e+00> : vector<8xf32>
    %138 = vector.multi_reduction <add>, %137, %cst_46 [1] : vector<8x12xf32> to vector<8xf32>
    %139 = vector.shape_cast %138 : vector<8xf32> to vector<8x1xf32>
    %140 = tpu.reciprocal %139 {approx = true} : vector<8x1xf32> -> vector<8x1xf32>
    %141 = vector.broadcast %140 : vector<8x1xf32> to vector<8x12xf32>
    %142 = arith.mulf %137, %141 : vector<8x12xf32>
    %143 = arith.truncf %142 : vector<8x12xf32> to vector<8x12xbf16>
    %cst_47 = arith.constant dense<0.000000e+00> : vector<8x16xf32>
    %144 = tpu.matmul %143, %131, %cst_47 {dimension_numbers = #tpu.dot_dimension_numbers<[1], [0], [0], [1], [0, 0, 1, 1], [], []>} : vector<8x12xbf16>, vector<12x16xbf16>, vector<8x16xf32> -> vector<8x16xf32>
    %145 = arith.truncf %144 : vector<8x16xf32> to vector<8x16xbf16>
    %c8_48 = arith.constant 8 : index
    %c16_49 = arith.constant 16 : index
    %146 = vector.load %arg9[%c8_48, %c16_49] : memref<16x80xbf16, #tpu.memory_space<vmem>>, vector<8x16xbf16>
    tpu.vector_store %arg9[%c8_48, %c16_49], %145 {strides = array<i32>} : memref<16x80xbf16, #tpu.memory_space<vmem>>, vector<8x16xbf16>,
    %147 = vector.extract_strided_slice %108 {offsets = [0, 32], sizes = [8, 16], strides = [1, 1]} : vector<8x80xbf16> to vector<8x16xbf16>
    %148 = vector.extract_strided_slice %109 {offsets = [0, 32], sizes = [12, 16], strides = [1, 1]} : vector<12x80xbf16> to vector<12x16xbf16>
    %149 = vector.extract_strided_slice %110 {offsets = [0, 32], sizes = [12, 16], strides = [1, 1]} : vector<12x80xbf16> to vector<12x16xbf16>
    %cst_50 = arith.constant dense<0.000000e+00> : vector<8x12xf32>
    %150 = tpu.matmul %147, %148, %cst_50 {dimension_numbers = #tpu.dot_dimension_numbers<[1], [1], [0], [0], [0, 0, 1, 0], [], []>} : vector<8x16xbf16>, vector<12x16xbf16>, vector<8x12xf32> -> vector<8x12xf32>
    %cst_51 = arith.constant dense<0xFF800000> : vector<8xf32>
    %151 = vector.multi_reduction <maximumf>, %150, %cst_51 [1] : vector<8x12xf32> to vector<8xf32>
    %152 = vector.shape_cast %151 : vector<8xf32> to vector<8x1xf32>
    %153 = vector.broadcast %152 : vector<8x1xf32> to vector<8x12xf32>
    %154 = arith.subf %150, %153 : vector<8x12xf32>
    %155 = math.exp %154 : vector<8x12xf32>
    %cst_52 = arith.constant dense<0.000000e+00> : vector<8xf32>
    %156 = vector.multi_reduction <add>, %155, %cst_52 [1] : vector<8x12xf32> to vector<8xf32>
    %157 = vector.shape_cast %156 : vector<8xf32> to vector<8x1xf32>
    %158 = tpu.reciprocal %157 {approx = true} : vector<8x1xf32> -> vector<8x1xf32>
    %159 = vector.broadcast %158 : vector<8x1xf32> to vector<8x12xf32>
    %160 = arith.mulf %155, %159 : vector<8x12xf32>
    %161 = arith.truncf %160 : vector<8x12xf32> to vector<8x12xbf16>
    %cst_53 = arith.constant dense<0.000000e+00> : vector<8x16xf32>
    %162 = tpu.matmul %161, %149, %cst_53 {dimension_numbers = #tpu.dot_dimension_numbers<[1], [0], [0], [1], [0, 0, 1, 1], [], []>} : vector<8x12xbf16>, vector<12x16xbf16>, vector<8x16xf32> -> vector<8x16xf32>
    %163 = arith.truncf %162 : vector<8x16xf32> to vector<8x16xbf16>
    %c8_54 = arith.constant 8 : index
    %c32_55 = arith.constant 32 : index
    %164 = vector.load %arg9[%c8_54, %c32_55] : memref<16x80xbf16, #tpu.memory_space<vmem>>, vector<8x16xbf16>
    tpu.vector_store %arg9[%c8_54, %c32_55], %163 {strides = array<i32>} : memref<16x80xbf16, #tpu.memory_space<vmem>>, vector<8x16xbf16>,
    %165 = vector.extract_strided_slice %108 {offsets = [0, 48], sizes = [8, 16], strides = [1, 1]} : vector<8x80xbf16> to vector<8x16xbf16>
    %166 = vector.extract_strided_slice %109 {offsets = [0, 48], sizes = [12, 16], strides = [1, 1]} : vector<12x80xbf16> to vector<12x16xbf16>
    %167 = vector.extract_strided_slice %110 {offsets = [0, 48], sizes = [12, 16], strides = [1, 1]} : vector<12x80xbf16> to vector<12x16xbf16>
    %cst_56 = arith.constant dense<0.000000e+00> : vector<8x12xf32>
    %168 = tpu.matmul %165, %166, %cst_56 {dimension_numbers = #tpu.dot_dimension_numbers<[1], [1], [0], [0], [0, 0, 1, 0], [], []>} : vector<8x16xbf16>, vector<12x16xbf16>, vector<8x12xf32> -> vector<8x12xf32>
    %cst_57 = arith.constant dense<0xFF800000> : vector<8xf32>
    %169 = vector.multi_reduction <maximumf>, %168, %cst_57 [1] : vector<8x12xf32> to vector<8xf32>
    %170 = vector.shape_cast %169 : vector<8xf32> to vector<8x1xf32>
    %171 = vector.broadcast %170 : vector<8x1xf32> to vector<8x12xf32>
    %172 = arith.subf %168, %171 : vector<8x12xf32>
    %173 = math.exp %172 : vector<8x12xf32>
    %cst_58 = arith.constant dense<0.000000e+00> : vector<8xf32>
    %174 = vector.multi_reduction <add>, %173, %cst_58 [1] : vector<8x12xf32> to vector<8xf32>
    %175 = vector.shape_cast %174 : vector<8xf32> to vector<8x1xf32>
    %176 = tpu.reciprocal %175 {approx = true} : vector<8x1xf32> -> vector<8x1xf32>
    %177 = vector.broadcast %176 : vector<8x1xf32> to vector<8x12xf32>
    %178 = arith.mulf %173, %177 : vector<8x12xf32>
    %179 = arith.truncf %178 : vector<8x12xf32> to vector<8x12xbf16>
    %cst_59 = arith.constant dense<0.000000e+00> : vector<8x16xf32>
    %180 = tpu.matmul %179, %167, %cst_59 {dimension_numbers = #tpu.dot_dimension_numbers<[1], [0], [0], [1], [0, 0, 1, 1], [], []>} : vector<8x12xbf16>, vector<12x16xbf16>, vector<8x16xf32> -> vector<8x16xf32>
    %181 = arith.truncf %180 : vector<8x16xf32> to vector<8x16xbf16>
    %c8_60 = arith.constant 8 : index
    %c48_61 = arith.constant 48 : index
    %182 = vector.load %arg9[%c8_60, %c48_61] : memref<16x80xbf16, #tpu.memory_space<vmem>>, vector<8x16xbf16>
    tpu.vector_store %arg9[%c8_60, %c48_61], %181 {strides = array<i32>} : memref<16x80xbf16, #tpu.memory_space<vmem>>, vector<8x16xbf16>,
    %183 = vector.extract_strided_slice %108 {offsets = [0, 64], sizes = [8, 16], strides = [1, 1]} : vector<8x80xbf16> to vector<8x16xbf16>
    %184 = vector.extract_strided_slice %109 {offsets = [0, 64], sizes = [12, 16], strides = [1, 1]} : vector<12x80xbf16> to vector<12x16xbf16>
    %185 = vector.extract_strided_slice %110 {offsets = [0, 64], sizes = [12, 16], strides = [1, 1]} : vector<12x80xbf16> to vector<12x16xbf16>
    %cst_62 = arith.constant dense<0.000000e+00> : vector<8x12xf32>
    %186 = tpu.matmul %183, %184, %cst_62 {dimension_numbers = #tpu.dot_dimension_numbers<[1], [1], [0], [0], [0, 0, 1, 0], [], []>} : vector<8x16xbf16>, vector<12x16xbf16>, vector<8x12xf32> -> vector<8x12xf32>
    %cst_63 = arith.constant dense<0xFF800000> : vector<8xf32>
    %187 = vector.multi_reduction <maximumf>, %186, %cst_63 [1] : vector<8x12xf32> to vector<8xf32>
    %188 = vector.shape_cast %187 : vector<8xf32> to vector<8x1xf32>
    %189 = vector.broadcast %188 : vector<8x1xf32> to vector<8x12xf32>
    %190 = arith.subf %186, %189 : vector<8x12xf32>
    %191 = math.exp %190 : vector<8x12xf32>
    %cst_64 = arith.constant dense<0.000000e+00> : vector<8xf32>
    %192 = vector.multi_reduction <add>, %191, %cst_64 [1] : vector<8x12xf32> to vector<8xf32>
    %193 = vector.shape_cast %192 : vector<8xf32> to vector<8x1xf32>
    %194 = tpu.reciprocal %193 {approx = true} : vector<8x1xf32> -> vector<8x1xf32>
    %195 = vector.broadcast %194 : vector<8x1xf32> to vector<8x12xf32>
    %196 = arith.mulf %191, %195 : vector<8x12xf32>
    %197 = arith.truncf %196 : vector<8x12xf32> to vector<8x12xbf16>
    %cst_65 = arith.constant dense<0.000000e+00> : vector<8x16xf32>
    %198 = tpu.matmul %197, %185, %cst_65 {dimension_numbers = #tpu.dot_dimension_numbers<[1], [0], [0], [1], [0, 0, 1, 1], [], []>} : vector<8x12xbf16>, vector<12x16xbf16>, vector<8x16xf32> -> vector<8x16xf32>
    %199 = arith.truncf %198 : vector<8x16xf32> to vector<8x16xbf16>
    %c8_66 = arith.constant 8 : index
    %c64_67 = arith.constant 64 : index
    %200 = vector.load %arg9[%c8_66, %c64_67] : memref<16x80xbf16, #tpu.memory_space<vmem>>, vector<8x16xbf16>
    tpu.vector_store %arg9[%c8_66, %c64_67], %199 {strides = array<i32>} : memref<16x80xbf16, #tpu.memory_space<vmem>>, vector<8x16xbf16>,
    %c0_68 = arith.constant 0 : index
    %c0_69 = arith.constant 0 : index
    %201 = vector.load %arg9[%c0_68, %c0_69] : memref<16x80xbf16, #tpu.memory_space<vmem>>, vector<16x80xbf16>
    %c0_70 = arith.constant 0 : index
    %c0_71 = arith.constant 0 : index
    %202 = vector.load %arg6[%c0_70, %c0_71] : memref<80x32xbf16, #tpu.memory_space<vmem>>, vector<80x32xbf16>
    %cst_72 = arith.constant dense<0.000000e+00> : vector<16x32xf32>
    %203 = tpu.matmul %201, %202, %cst_72 {dimension_numbers = #tpu.dot_dimension_numbers<[1], [0], [0], [1], [0, 0, 1, 1], [], []>} : vector<16x80xbf16>, vector<80x32xbf16>, vector<16x32xf32> -> vector<16x32xf32>
    %c0_73 = arith.constant 0 : index
    %c0_74 = arith.constant 0 : index
    %204 = vector.load %arg7[%c0_73, %c0_74] : memref<1x32xf32, #tpu.memory_space<vmem>>, vector<1x32xf32>
    %205 = vector.broadcast %204 : vector<1x32xf32> to vector<16x32xf32>
    %206 = arith.addf %203, %205 : vector<16x32xf32>
    %207 = vector.shape_cast %206 : vector<16x32xf32> to vector<2x8x32xf32>
    %c0_75 = arith.constant 0 : index
    %c0_76 = arith.constant 0 : index
    %c0_77 = arith.constant 0 : index
    %208 = vector.load %arg8[%c0_75, %c0_76, %c0_77] : memref<2x8x32xf32, #tpu.memory_space<vmem>>, vector<2x8x32xf32>
    tpu.vector_store %arg8[%c0_75, %c0_76, %c0_77], %207 {strides = array<i32>} : memref<2x8x32xf32, #tpu.memory_space<vmem>>, vector<2x8x32xf32>,
    return
  }
  func.func @transform_0(%arg0: i32) -> (i32, i32, i32) {
    %c0_i32 = arith.constant 0 : i32
    %c0_i32_0 = arith.constant 0 : i32
    %c0_i32_1 = arith.constant 0 : i32
    return %arg0, %c0_i32, %c0_i32_0 : i32, i32, i32
  }
  func.func @transform_1(%arg0: i32) -> (i32, i32, i32) {
    %c0_i32 = arith.constant 0 : i32
    %c0_i32_0 = arith.constant 0 : i32
    %c0_i32_1 = arith.constant 0 : i32
    return %arg0, %c0_i32, %c0_i32_0 : i32, i32, i32
  }
  func.func @transform_2(%arg0: i32) -> (i32, i32) {
    %c0_i32 = arith.constant 0 : i32
    %c0_i32_0 = arith.constant 0 : i32
    %c0_i32_1 = arith.constant 0 : i32
    return %c0_i32, %c0_i32_0 : i32, i32
  }
  func.func @transform_3(%arg0: i32) -> (i32, i32) {
    %c0_i32 = arith.constant 0 : i32
    %c0_i32_0 = arith.constant 0 : i32
    %c0_i32_1 = arith.constant 0 : i32
    return %c0_i32, %c0_i32_0 : i32, i32
  }
  func.func @transform_4(%arg0: i32) -> (i32, i32) {
    %c0_i32 = arith.constant 0 : i32
    %c0_i32_0 = arith.constant 0 : i32
    %c0_i32_1 = arith.constant 0 : i32
    return %c0_i32, %c0_i32_0 : i32, i32
  }
  func.func @transform_5(%arg0: i32) -> (i32, i32) {
    %c0_i32 = arith.constant 0 : i32
    %c0_i32_0 = arith.constant 0 : i32
    %c0_i32_1 = arith.constant 0 : i32
    return %c0_i32, %c0_i32_0 : i32, i32
  }
  func.func @transform_6(%arg0: i32) -> (i32, i32) {
    %c0_i32 = arith.constant 0 : i32
    %c0_i32_0 = arith.constant 0 : i32
    %c0_i32_1 = arith.constant 0 : i32
    return %c0_i32, %c0_i32_0 : i32, i32
  }
  func.func @transform_7(%arg0: i32) -> (i32, i32, i32) {
    %c0_i32 = arith.constant 0 : i32
    %c0_i32_0 = arith.constant 0 : i32
    %c0_i32_1 = arith.constant 0 : i32
    return %arg0, %c0_i32, %c0_i32_0 : i32, i32, i32
  }
}

</mosaic_0001>

<bundles_post_ra>
// kernel: tpu_custom_call.1
= control target key start
LH: loop header
LB: loop body
LE: loop exit
PB: predicated region body
PF: predicated region fallthrough
CT: control target
= control target key end

     0   :  { %v1959_v1 = vmov 0.0   ;;  %vm1960_vm0 = vmmov 0   ;;  %vm183_vm1 = vcmask 1043456   ;;  %v44_v5 = vlaneseq  ;;  %s2311_s0 = inlined_call_operand.vmem [shape: f32[2,8,32], index: 0, kind: input, shape index: {}]   ;;  %s2312_s1 = inlined_call_operand.vmem [shape: f32[2,12,24], index: 1, kind: input, shape index: {}]   ;;  %s2313_s2 = inlined_call_operand.vmem [shape: bf16[32,80], index: 2, kind: input, shape index: {}]   ;;  %s2314_s3 = inlined_call_operand.vmem [shape: bf16[24,80], index: 3, kind: input, shape index: {}]   ;;  %s2315_s4 = inlined_call_operand.vmem [shape: bf16[24,80], index: 4, kind: input, shape index: {}]   ;;  %s2316_s5 = inlined_call_operand.vmem [shape: bf16[80,32], index: 5, kind: input, shape index: {}]   ;;  %s2317_s6 = inlined_call_operand.vmem [shape: f32[1,32], index: 6, kind: input, shape index: {}]   ;;  %s2318_s7 = inlined_call_operand.hbm [shape: f32[2,8,32], index: 7, kind: output, shape index: {}]  }
   0x1   :  { %v1885_v0 = vld [vmem:[%s2313_s2 + $0x8] sm:$0xff]   ;;  %1712 = vmatprep.subr.bf16.mxu0 %v1959_v1  ;;  %v1886_v2 = vld [vmem:[%s2313_s2] sm:$0xff]   ;;  %1736 = vmatprep.subr.bf16.mxu1 %v1959_v1  ;;  %vm93_vm2 = vcmask 261120   ;;  %v34_v11 = vld [vmem:[%s2312_s1 + $0x10] sm:$0xff]  ;;  %v1961_v13 = vmov 1983009808  }
   0x2   :  { %1713 = vmatpush3.bf16.msra.mxu0 %v1885_v0  ;;  %1716 = vmatprep.mubr.msk.bf16.mxu0 %vm1960_vm0, %v1959_v1  ;;  %v28_v3 = vld [vmem:[%s2311_s0] sm:$0xff]  ;;  %v29_v4 = vld [vmem:[%s2311_s0 + $0x8] sm:$0xff]  ;;  %v35_v12 = vld [vmem:[%s2312_s1 + $0x18] sm:$0xf]  ;;  %v42_v14 = vunpack.c.l.s4 %v1961_v13  ;;  %v45_v17 = vshrl.u32 %v44_v5, 7 }
   0x3   :  { %1714 = vmatprep.subr.bf16.mxu0 %v1959_v1  ;;  %v1887_v6 = vld [vmem:[%s2314_s3 + $0x8] ss:$0 sps:$4 sm:$0xff]   ;;  %1738 = vmatprep.mubr.msk.bf16.mxu1 %vm1960_vm0, %v1959_v1  ;;  %v32_v7 = vld [vmem:[%s2312_s1] sm:$0xff]  ;;  %v1646_v9 = vpack.c.bf16 %v29_v4, %v28_v3  ;;  %v37_v18 = vpack.c.bf16 %v35_v12, %v34_v11  ;;  %v1597_v21 = vpack.c.bf16 %v35_v12, %v35_v12 }
   0x4   :  { %v33_v8 = vld [vmem:[%s2312_s1 + $0x8] sm:$0xf]  ;;  %v1888_v10 = vld [vmem:[%s2314_s3] sm:$0xff]   ;;  %v185_v15 = vsel %vm183_vm1, %v1887_v6, 0  ;;  %v43_v20 = vunpack.c.0.s8 %v42_v14 }
   0x5   :  { %v36_v16 = vpack.c.bf16 %v33_v8, %v32_v7  ;;  %v1596_v19 = vpack.c.bf16 %v33_v8, %v33_v8 }
   0x6   :  { %1715 = vmatpush3.bf16.msra.mxu0 %v1886_v2  ;;  %v46_v22 = vsub.s32 %v43_v20, %v45_v17 }
   0x7   :  { %1870 = vmatprep.subr.msk.bf16.mxu0 %vm183_vm1, %v1887_v6 }
   0x9   :  { %1717 = vmatmul.mubr.msk.bf16.vlgmr.msra.gmra.mxu0 %vm93_vm2, %v1646_v9 }
   0xa   :  { %1721 = vmatpush3.bf16.msra.mxu0 %v185_v15 }
   0xb   :  { %12 = vsyncpa [#allocation4], 0  ;;  %1722 = vmatprep.subr.bf16.mxu0 %v1888_v10  ;;  %v47_v23 = vrot.slane %v36_v16, %v46_v22  ;;  %v54_v24 = vrot.slane %v1596_v19, %v46_v22  ;;  %v63_v25 = vrot.slane %v37_v18, %v46_v22  ;;  %v70_v26 = vrot.slane %v1597_v21, %v46_v22  ;;  %s1962_s1 = smov 96   ;;  %s1963_s3 = smov 112   ;;  %v1889_v52 = vld [vmem:[%s2315_s4 + $0x8] ss:$0 sps:$4 sm:$0xff]  }
   0xc   :  { %vm176_vm3 = vcmask 195584   ;;  %vm302_vm4 = vcmask 130048   ;;  %s1964_s19 = smov 80   ;;  %s1965_s20 = smov 64   ;;  %vm893_vm5 = vcmask 1041408   ;;  %v1890_v53 = vld [vmem:[%s2315_s4] sm:$0xff]  }
   0xd   :  { %v55_v27 = vcombine.high %v47_v23, %v47_v23  ;;  %v71_v28 = vcombine.high %v63_v25, %v63_v25  ;;  %v143_v29 = vcombine.low %v54_v24, %v63_v25  ;;  %v250_v54 = vsel %vm183_vm1, %v1889_v52, 0  ;;  %s1966_s4 = smov 16   ;;  %s1967_s25 = smov 32  }
   0xe   :  { %1723 = vmatpush3.bf16.msra.mxu0 %v1888_v10  ;;  %vm349_vm6 = vcmask 97280   ;;  %vm365_vm7 = vcmask 1045504   ;;  %vm410_vm8 = vcmask 125952   ;;  %s1968_s26 = smov 48   ;;  %vm532_vm9 = vcmask 257152   ;;  %s1969_s0 = smov [#allocation3]  }
   0xf   :  { %v142_v30 = vcombine.low %v47_v23, %v55_v27  ;;  %v157_v31 = vrot.slane %v143_v29, %v46_v22  ;;  %v159_v32 = vcombine.low %v71_v28, %v70_v26  ;;  %1871 = vmatprep.subr.msk.bf16.mxu0 %vm183_vm1, %v1889_v52  ;;  %vm651_vm10 = vcmask 388352   ;;  %s1585_s14 = sshll.u32 %s1969_s0, 4  ;;  %s1586_s14 = int_to_ptr.vmem [resolvable:$true] %s1585_s14 }
  0x10   :  { %vm770_vm11 = vcmask 519552   ;;  %vm889_vm12 = vcmask 650752   ;;  %vm1533_vm13 = vcmask 654336   ;;  %s1937_s15 = scalar_lea.vmem %s1586_s14, 256  ;;  %p1942_p1 = scmp.lt.s32.totalorder %s1586_s14, %s1586_s14 }
  0x11   :  { %v150_v33 = vrot.slane %v142_v30, %v46_v22  ;;  %v166_v34 = vrot.slane %v159_v32, %v46_v22  ;;  %p1938_p0 = scmp.ne.s32.totalorder %s1586_s14, %s1937_s15  ;;  %p1943_p2 = scmp.lt.s32.totalorder %s1937_s15, %s1937_s15 }
  0x13   :  { %v158_v35 = vcombine.low %v150_v33, %v157_v31  ;;  %p1944_p3 = por %p1943_p2, %p1942_p1 }
  0x15   :  { %1724 = vmatprep.mubr.msk.bf16.mxu0 %vm176_vm3, %v158_v35  ;;  %p1945_p4 = pnand %p1944_p3, %p1938_p0 }
  0x16   :  { %1725 = vmatmul.mubr.msk.bf16.vlgmr.msra.gmra.mxu0 %vm176_vm3, %v166_v34 }
  0x17   :  { %1732 = vmatprep.mubr.msk.bf16.mxu0 %vm176_vm3, %v158_v35  ;;  %1729 = vmatpush3.bf16.msra.mxu0 %v250_v54 }
  0x18   :  { %1730 = vmatprep.subr.bf16.mxu0 %v1890_v53 }
  0x1b   :  { %1731 = vmatpush3.bf16.msra.mxu0 %v1890_v53 }
  0x1c   :  { %1742 = vmatprep.subr.bf16.mxu0 %v1959_v1 }
  0x1e   :  { %1733 = vmatmul.mubr.msk.bf16.vlgmr.msra.gmra.mxu0 %vm176_vm3, %v166_v34 }
  0x1f   :  { %1744 = vmatprep.mubr.msk.bf16.mxu0 %vm1960_vm0, %v1959_v1 }
  0xc9   :  { %v131_v36 = vpop.f32.mrf.mxu0 }
  0xcb   :  { %v1718_v37 = vpop.f32.mrf.mxu0 }
  0xcd   :  { %v134_v38 = vpop.f32.mrf.mxu0 }
  0xce   :  { %v138_v46 = vpack.c.bf16 %v134_v38, %v131_v36 }
  0xcf   :  { %v1719_v39 = vpop.f32.mrf.mxu0 }
  0xd0   :  { %v891_v50 = vrot.slane %v138_v46, 4 }
  0xd6   :  { %v1726_v40 = vpop.f32.mrf.mxu0 }
  0xd7   :  { %v236_v47 = vpack.c.bf16 %v1726_v40, %v1726_v40 }
  0xd8   :  { %v221_v41 = vpop.f32.mrf.mxu0 }
  0xd9   :  { %v895_v49 = vrot.slane %v236_v47, 6 }
  0xda   :  { %v1727_v42 = vpop.f32.mrf.mxu0 }
  0xdc   :  { %v224_v43 = vpop.f32.mrf.mxu0 }
  0xdd   :  { %v235_v44 = vpack.c.bf16 %v224_v43, %v221_v41 }
  0xde   :  { %v2135_v22 = vpop.f32.mrf.mxu0 }
  0xdf   :  { %536 = vrot.lane.b32.xlu1 %v235_v44, %s1962_s1  ;;  %416 = vrot.lane.b32.xlu0 %v235_v44, %s1963_s3  ;;  %v307_v45 = vsel %vm302_vm4, %v235_v44, 0  ;;  %v894_v48 = vrot.slane %v235_v44, 6 }
  0xe0   :  { %1737 = vmatpush3.bf16.xpose.msra.mxu1 %v307_v45  ;;  %v286_v23 = vpop.f32.mrf.mxu0 }
  0xe1   :  { %1748 = vmatprep.subr.bf16.mxu1 %v1959_v1  ;;  %v896_v51 = vsel %vm893_vm5, %v894_v48, %v895_v49 }
  0xe2   :  { %v901_v4 = vsel %vm302_vm4, %v896_v51, 0  ;;  %v1735_v24 = vpop.f32.mrf.mxu0 }
  0xe3   :  { %534 = vrot.lane.b32.xlu1 %v138_v46, %s1962_s1  ;;  %413 = vrot.lane.b32.xlu0 %v138_v46, %s1963_s3 }
  0xe4   :  { %v289_v25 = vpop.f32.mrf.mxu0 }
  0xe5   :  { %v2137_v26 = vpack.c.bf16 %v289_v25, %v286_v23 }
  0xe7   :  { %653 = vrot.lane.b32.xlu1 %v138_v46, %s1964_s19  ;;  %655 = vrot.lane.b32.xlu0 %v235_v44, %s1964_s19  ;;  %v367_v27 = vsel %vm365_vm7, %v2137_v26, 0 }
  0xe8   :  { %1739 = vmatmul.mubr.msk.bf16.vlgmr.msra.gmra.mxu1 %vm302_vm4, %v138_v46  ;;  %1743 = vmatpush3.bf16.msra.mxu0 %v367_v27 }
  0xe9   :  { %1750 = vmatprep.mubr.msk.bf16.mxu1 %vm1960_vm0, %v1959_v1  ;;  %1754 = vmatprep.subr.bf16.mxu0 %v1959_v1 }
  0xeb   :  { %772 = vrot.lane.b32.xlu1 %v138_v46, %s1965_s20  ;;  %774 = vrot.lane.b32.xlu0 %v235_v44, %s1965_s20 }
  0xef   :  { %1007 = vrot.lane.b32.xlu1 %v891_v50, %s1963_s3  ;;  %1009 = vrot.lane.b32.xlu0 %v896_v51, %s1963_s3 }
  0xf3   :  { %1125 = vrot.lane.b32.xlu1 %v891_v50, %s1962_s1  ;;  %1127 = vrot.lane.b32.xlu0 %v896_v51, %s1962_s1 }
  0xf7   :  { %1243 = vrot.lane.b32.xlu1 %v891_v50, %s1964_s19  ;;  %1245 = vrot.lane.b32.xlu0 %v896_v51, %s1964_s19 }
  0xfb   :  { %1361 = vrot.lane.b32.xlu1 %v891_v50, %s1965_s20  ;;  %1363 = vrot.lane.b32.xlu0 %v896_v51, %s1965_s20 }
 0x151   :  { %v417_v55 = vpop.permute.xlu0 %416  ;;  %v537_v57 = vpop.permute.xlu1 %536 }
 0x152   :  { %v422_v56 = vsel %vm302_vm4, %v417_v55, 0  ;;  %v542_v59 = vsel %vm302_vm4, %v537_v57, 0 }
 0x153   :  { %1749 = vmatpush3.bf16.xpose.msra.mxu1 %v422_v56 }
 0x154   :  { %1760 = vmatprep.subr.bf16.mxu1 %v1959_v1 }
 0x155   :  { %v414_v58 = vpop.permute.xlu0 %413  ;;  %v535_v61 = vpop.permute.xlu1 %534 }
 0x159   :  { %v656_v60 = vpop.permute.xlu0 %655  ;;  %v654_v0 = vpop.permute.xlu1 %653 }
 0x15a   :  { %1751 = vmatmul.mubr.msk.bf16.vlgmr.msra.gmra.mxu1 %vm302_vm4, %v414_v58  ;;  %v661_v62 = vsel %vm302_vm4, %v656_v60, 0 }
 0x15b   :  { %1761 = vmatpush3.bf16.xpose.msra.mxu1 %v542_v59  ;;  %1762 = vmatprep.mubr.msk.bf16.mxu1 %vm1960_vm0, %v1959_v1 }
 0x15c   :  { %1772 = vmatprep.subr.bf16.mxu1 %v1959_v1 }
 0x15d   :  { %v775_v63 = vpop.permute.xlu0 %774  ;;  %v773_v3 = vpop.permute.xlu1 %772 }
 0x15e   :  { %v780_v2 = vsel %vm302_vm4, %v775_v63, 0 }
 0x161   :  { %v1010_v5 = vpop.permute.xlu0 %1009  ;;  %v1008_v8 = vpop.permute.xlu1 %1007 }
 0x162   :  { %1763 = vmatmul.mubr.msk.bf16.vlgmr.msra.gmra.mxu1 %vm302_vm4, %v535_v61  ;;  %v1015_v6 = vsel %vm302_vm4, %v1010_v5, 0 }
 0x163   :  { %1773 = vmatpush3.bf16.xpose.msra.mxu1 %v661_v62  ;;  %1774 = vmatprep.mubr.msk.bf16.mxu1 %vm1960_vm0, %v1959_v1 }
 0x164   :  { %1784 = vmatprep.subr.bf16.mxu1 %v1959_v1 }
 0x165   :  { %v1128_v7 = vpop.permute.xlu0 %1127  ;;  %v1126_v11 = vpop.permute.xlu1 %1125 }
 0x166   :  { %v1133_v9 = vsel %vm302_vm4, %v1128_v7, 0 }
 0x169   :  { %v1246_v10 = vpop.permute.xlu0 %1245  ;;  %v1244_v14 = vpop.permute.xlu1 %1243 }
 0x16a   :  { %1775 = vmatmul.mubr.msk.bf16.vlgmr.msra.gmra.mxu1 %vm302_vm4, %v654_v0  ;;  %v1251_v12 = vsel %vm302_vm4, %v1246_v10, 0 }
 0x16b   :  { %1785 = vmatpush3.bf16.xpose.msra.mxu1 %v780_v2  ;;  %1786 = vmatprep.mubr.msk.bf16.mxu1 %vm1960_vm0, %v1959_v1 }
 0x16c   :  { %1796 = vmatprep.subr.bf16.mxu1 %v1959_v1 }
 0x16d   :  { %v1364_v13 = vpop.permute.xlu0 %1363  ;;  %v1362_v16 = vpop.permute.xlu1 %1361 }
 0x16e   :  { %v1369_v15 = vsel %vm302_vm4, %v1364_v13, 0 }
 0x172   :  { %1787 = vmatmul.mubr.msk.bf16.vlgmr.msra.gmra.mxu1 %vm302_vm4, %v773_v3 }
 0x173   :  { %1797 = vmatpush3.bf16.xpose.msra.mxu1 %v901_v4  ;;  %1798 = vmatprep.mubr.msk.bf16.mxu1 %vm1960_vm0, %v1959_v1 }
 0x174   :  { %1808 = vmatprep.subr.bf16.mxu1 %v1959_v1 }
 0x17a   :  { %1799 = vmatmul.mubr.msk.bf16.vlgmr.msra.gmra.mxu1 %vm302_vm4, %v891_v50 }
 0x17b   :  { %1809 = vmatpush3.bf16.xpose.msra.mxu1 %v1015_v6  ;;  %1810 = vmatprep.mubr.msk.bf16.mxu1 %vm1960_vm0, %v1959_v1 }
 0x17c   :  { %1820 = vmatprep.subr.bf16.mxu1 %v1959_v1 }
 0x182   :  { %1811 = vmatmul.mubr.msk.bf16.vlgmr.msra.gmra.mxu1 %vm302_vm4, %v1008_v8 }
 0x183   :  { %1821 = vmatpush3.bf16.xpose.msra.mxu1 %v1133_v9  ;;  %1822 = vmatprep.mubr.msk.bf16.mxu1 %vm1960_vm0, %v1959_v1 }
 0x184   :  { %1832 = vmatprep.subr.bf16.mxu1 %v1959_v1 }
 0x18a   :  { %1823 = vmatmul.mubr.msk.bf16.vlgmr.msra.gmra.mxu1 %vm302_vm4, %v1126_v11 }
 0x18b   :  { %1833 = vmatpush3.bf16.xpose.msra.mxu1 %v1251_v12  ;;  %1834 = vmatprep.mubr.msk.bf16.mxu1 %vm1960_vm0, %v1959_v1 }
 0x18c   :  { %1844 = vmatprep.subr.bf16.mxu1 %v1959_v1 }
 0x192   :  { %1835 = vmatmul.mubr.msk.bf16.vlgmr.msra.gmra.mxu1 %vm302_vm4, %v1244_v14 }
 0x193   :  { %1845 = vmatpush3.bf16.xpose.msra.mxu1 %v1369_v15  ;;  %1846 = vmatprep.mubr.msk.bf16.mxu1 %vm1960_vm0, %v1959_v1 }
 0x194   :  { %1856 = vmatprep.subr.bf16.mxu1 %v1959_v1 }
 0x19a   :  { %1847 = vmatmul.mubr.msk.bf16.vlgmr.msra.gmra.mxu1 %vm302_vm4, %v1362_v16 }
 0x19b   :  { %1866 = vmatprep.mubr.msk.bf16.mxu1 %vm1960_vm0, %v1959_v1 }
 0x1a8   :  { %v343_v17 = vpop.f32.mrf.mxu1 }
 0x1a9   :  { %v350_v18 = vsel %vm349_vm6, %v343_v17, -inf }
 0x1aa   :  { %351 = vmax.xlane.f32.xlu0 %v350_v18  ;;  %v1740_v19 = vpop.f32.mrf.mxu1 }
 0x1ac   :  { %v346_v20 = vpop.f32.mrf.mxu1 }
 0x1ae   :  { %v1741_v21 = vpop.f32.mrf.mxu1 }
 0x21a   :  { %v2142_v28 = vpop.f32.mrf.mxu1 }
 0x21b   :  { %v464_v29 = vsel %vm349_vm6, %v2142_v28, -inf }
 0x21c   :  { %465 = vmax.xlane.f32.xlu1 %v464_v29  ;;  %v1752_v30 = vpop.f32.mrf.mxu1 }
 0x21e   :  { %v461_v31 = vpop.f32.mrf.mxu1 }
 0x220   :  { %v1753_v32 = vpop.f32.mrf.mxu1 }
 0x222   :  { %v578_v33 = vpop.f32.mrf.mxu1 }
 0x223   :  { %v584_v34 = vsel %vm349_vm6, %v578_v33, -inf }
 0x224   :  { %585 = vmax.xlane.f32.xlu0 %v584_v34  ;;  %v1764_v35 = vpop.f32.mrf.mxu1 }
 0x226   :  { %v581_v36 = vpop.f32.mrf.mxu1 }
 0x228   :  { %v1765_v37 = vpop.f32.mrf.mxu1 }
 0x22a   :  { %v2147_v38 = vpop.f32.mrf.mxu1 }
 0x22b   :  { %v703_v39 = vsel %vm349_vm6, %v2147_v38, -inf }
 0x22c   :  { %704 = vmax.xlane.f32.xlu0 %v703_v39  ;;  %v1776_v40 = vpop.f32.mrf.mxu1 }
 0x22e   :  { %v700_v41 = vpop.f32.mrf.mxu1 }
 0x230   :  { %v1777_v42 = vpop.f32.mrf.mxu1 }
 0x232   :  { %v2151_v43 = vpop.f32.mrf.mxu1 }
 0x233   :  { %v352_v44 = vpop.xlane.xlu0 %351  ;;  %v822_v45 = vsel %vm349_vm6, %v2151_v43, -inf }
 0x234   :  { %v353_v46 = vsub.f32 %v343_v17, %v352_v44  ;;  %823 = vmax.xlane.f32.xlu1 %v822_v45  ;;  %v1788_v47 = vpop.f32.mrf.mxu1 }
 0x236   :  { %v354_v48 = vmul.f32 1.442695, %v353_v46  ;;  %v819_v49 = vpop.f32.mrf.mxu1 }
 0x238   :  { %1897 = vpow2.f32 %v354_v48  ;;  %v1789_v50 = vpop.f32.mrf.mxu1 }
 0x23a   :  { %v2155_v51 = vpop.f32.mrf.mxu1 }
 0x23b   :  { %v943_v52 = vsel %vm349_vm6, %v2155_v51, -inf }
 0x23c   :  { %944 = vmax.xlane.f32.xlu0 %v943_v52  ;;  %v1800_v53 = vpop.f32.mrf.mxu1 }
 0x23e   :  { %v940_v54 = vpop.f32.mrf.mxu1 }
 0x240   :  { %v1801_v55 = vpop.f32.mrf.mxu1 }
 0x242   :  { %v1051_v56 = vpop.f32.mrf.mxu1 }
 0x243   :  { %v1057_v57 = vsel %vm349_vm6, %v1051_v56, -inf }
 0x244   :  { %1058 = vmax.xlane.f32.xlu1 %v1057_v57  ;;  %v1812_v58 = vpop.f32.mrf.mxu1 }
 0x245   :  { %v1898_v59 = vpop.eup %1897 }
 0x246   :  { %v1054_v60 = vpop.f32.mrf.mxu1  ;;  %v356_v61 = vsel %vm349_vm6, %v1898_v59, 0.0 }
 0x248   :  { %357 = vadd.xlane.f32.xlu1 %v356_v61  ;;  %v1813_v62 = vpop.f32.mrf.mxu1 }
 0x24a   :  { %v1169_v63 = vpop.f32.mrf.mxu1 }
 0x24b   :  { %v1175_v0 = vsel %vm349_vm6, %v1169_v63, -inf }
 0x24c   :  { %1176 = vmax.xlane.f32.xlu0 %v1175_v0  ;;  %v1824_v2 = vpop.f32.mrf.mxu1 }
 0x24d   :  { %v301_v2 = vpack.c.bf16 %v2135_v22, %v2135_v22 }
 0x24e   :  { %v1172_v3 = vpop.f32.mrf.mxu1 }
 0x250   :  { %v1825_v4 = vpop.f32.mrf.mxu1 }
 0x251   :  { %v957_v4 = vrot.slane %v301_v2, 6 }
 0x252   :  { %v1287_v5 = vpop.f32.mrf.mxu1 }
 0x253   :  { %v1293_v6 = vsel %vm349_vm6, %v1287_v5, -inf }
 0x254   :  { %1294 = vmax.xlane.f32.xlu1 %v1293_v6  ;;  %v1836_v7 = vpop.f32.mrf.mxu1 }
 0x256   :  { %v1290_v8 = vpop.f32.mrf.mxu1 }
 0x258   :  { %v1837_v9 = vpop.f32.mrf.mxu1 }
 0x25a   :  { %v1405_v10 = vpop.f32.mrf.mxu1 }
 0x25b   :  { %v1411_v11 = vsel %vm349_vm6, %v1405_v10, -inf }
 0x25c   :  { %1412 = vmax.xlane.f32.xlu0 %v1411_v11  ;;  %v1848_v12 = vpop.f32.mrf.mxu1 }
 0x25e   :  { %v1408_v13 = vpop.f32.mrf.mxu1 }
 0x260   :  { %v1849_v14 = vpop.f32.mrf.mxu1 }
 0x265   :  { %596 = vrot.lane.b32.xlu1 %v2137_v26, %s1962_s1 }
 0x2a5   :  { %v466_v15 = vpop.xlane.xlu1 %465 }
 0x2a6   :  { %v467_v16 = vsub.f32 %v2142_v28, %v466_v15 }
 0x2a8   :  { %v468_v17 = vmul.f32 1.442695, %v467_v16 }
 0x2aa   :  { %1899 = vpow2.f32 %v468_v17 }
 0x2ad   :  { %v586_v18 = vpop.xlane.xlu0 %585 }
 0x2ae   :  { %v587_v19 = vsub.f32 %v578_v33, %v586_v18 }
 0x2b0   :  { %v588_v20 = vmul.f32 1.442695, %v587_v19 }
 0x2b2   :  { %1901 = vpow2.f32 %v588_v20 }
 0x2b5   :  { %v705_v30 = vpop.xlane.xlu0 %704 }
 0x2b6   :  { %v706_v31 = vsub.f32 %v2147_v38, %v705_v30 }
 0x2b7   :  { %v2167_v21 = vpop.eup %1899 }
 0x2b8   :  { %v470_v23 = vsel %vm349_vm6, %v2167_v21, 0.0  ;;  %v707_v32 = vmul.f32 1.442695, %v706_v31 }
 0x2b9   :  { %471 = vadd.xlane.f32.xlu0 %v470_v23 }
 0x2bd   :  { %v824_v27 = vpop.xlane.xlu1 %823 }
 0x2be   :  { %v825_v34 = vsub.f32 %v2151_v43, %v824_v27 }
 0x2bf   :  { %v2171_v24 = vpop.eup %1901 }
 0x2c0   :  { %v590_v25 = vsel %vm349_vm6, %v2171_v24, 0.0  ;;  %v826_v39 = vmul.f32 1.442695, %v825_v34 }
 0x2c1   :  { %591 = vadd.xlane.f32.xlu1 %v590_v25 }
 0x2c5   :  { %v945_v36 = vpop.xlane.xlu0 %944 }
 0x2c6   :  { %v946_v40 = vsub.f32 %v2155_v51, %v945_v36 }
 0x2c8   :  { %v947_v45 = vmul.f32 1.442695, %v946_v40 }
 0x2cd   :  { %v1059_v28 = vpop.xlane.xlu1 %1058 }
 0x2ce   :  { %v1060_v33 = vsub.f32 %v1051_v56, %v1059_v28 }
 0x2cf   :  { %477 = vrot.lane.b32.xlu0 %v2137_v26, %s1963_s3 }
 0x2d0   :  { %v1061_v35 = vmul.f32 1.442695, %v1060_v33 }
 0x2d1   :  { %v358_v29 = vpop.xlane.xlu1 %357 }
 0x2d2   :  { %715 = vrot.lane.b32.xlu1 %v2137_v26, %s1964_s19  ;;  %1903 = vrcp.f32 %v358_v29 }
 0x2d3   :  { %1905 = vpow2.f32 %v707_v32 }
 0x2d4   :  { %1907 = vpow2.f32 %v1061_v35 }
 0x2d5   :  { %v1177_v42 = vpop.xlane.xlu0 %1176  ;;  %1909 = vpow2.f32 %v826_v39 }
 0x2d6   :  { %v1178_v46 = vsub.f32 %v1169_v63, %v1177_v42  ;;  %1911 = vpow2.f32 %v947_v45 }
 0x2d8   :  { %v1179_v43 = vmul.f32 1.442695, %v1178_v46 }
 0x2da   :  { %1913 = vpow2.f32 %v1179_v43 }
 0x2dd   :  { %v1295_v38 = vpop.xlane.xlu1 %1294 }
 0x2de   :  { %v1296_v47 = vsub.f32 %v1287_v5, %v1295_v38  ;;  %v956_v5 = vrot.slane %v2137_v26, 6 }
 0x2df   :  { %v1904_v37 = vpop.eup %1903 }
 0x2e0   :  { %v360_v41 = vmul.f32 %v1904_v37, %v1898_v59  ;;  %v2185_v48 = vpop.eup %1905  ;;  %v1297_v50 = vmul.f32 1.442695, %v1296_v47  ;;  %v958_v6 = vsel %vm893_vm5, %v956_v5, %v957_v4 }
 0x2e1   :  { %v709_v52 = vsel %vm349_vm6, %v2185_v48, 0.0  ;;  %v2189_v53 = vpop.eup %1907  ;;  %v597_v7 = vpop.permute.xlu1 %596  ;;  %v963_v37 = vsel %vm365_vm7, %v958_v6, 0 }
 0x2e2   :  { %v361_v44 = vpack.c.bf16 %v360_v41, %v360_v41  ;;  %1915 = vpow2.f32 %v1297_v50  ;;  %v1063_v55 = vsel %vm349_vm6, %v2189_v53, 0.0  ;;  %v2193_v56 = vpop.eup %1909  ;;  %v602_v13 = vsel %vm365_vm7, %v597_v7, 0 }
 0x2e3   :  { %v828_v57 = vsel %vm349_vm6, %v2193_v56, 0.0  ;;  %v2197_v58 = vpop.eup %1911 }
 0x2e4   :  { %1745 = vmatmul.mubr.msk.bf16.vlgmr.msra.gmra.mxu0 %vm349_vm6, %v361_v44  ;;  %v949_v59 = vsel %vm349_vm6, %v2197_v58, 0.0 }
 0x2e5   :  { %1756 = vmatprep.mubr.msk.bf16.mxu0 %vm1960_vm0, %v1959_v1  ;;  %v1413_v49 = vpop.xlane.xlu0 %1412 }
 0x2e6   :  { %v1414_v51 = vsub.f32 %v1405_v10, %v1413_v49 }
 0x2e7   :  { %v2201_v60 = vpop.eup %1913 }
 0x2e8   :  { %v1415_v54 = vmul.f32 1.442695, %v1414_v51  ;;  %v1181_v61 = vsel %vm349_vm6, %v2201_v60, 0.0 }
 0x2ea   :  { %1917 = vpow2.f32 %v1415_v54 }
 0x2ee   :  { %710 = vadd.xlane.f32.xlu0 %v709_v52 }
 0x2ef   :  { %v2205_v62 = vpop.eup %1915 }
 0x2f0   :  { %v1299_v63 = vsel %vm349_vm6, %v2205_v62, 0.0 }
 0x2f2   :  { %1064 = vadd.xlane.f32.xlu0 %v1063_v55 }
 0x2f6   :  { %829 = vadd.xlane.f32.xlu1 %v828_v57 }
 0x2f7   :  { %v2209_v0 = vpop.eup %1917 }
 0x2f8   :  { %v1417_v3 = vsel %vm349_vm6, %v2209_v0, 0.0 }
 0x2fa   :  { %950 = vadd.xlane.f32.xlu1 %v949_v59 }
 0x2fe   :  { %1182 = vadd.xlane.f32.xlu1 %v1181_v61 }
 0x302   :  { %1300 = vadd.xlane.f32.xlu1 %v1299_v63 }
 0x306   :  { %1418 = vadd.xlane.f32.xlu1 %v1417_v3 }
 0x308   :  { %834 = vrot.lane.b32.xlu0 %v2137_v26, %s1965_s20 }
 0x30c   :  { %1187 = vrot.lane.b32.xlu0 %v958_v6, %s1962_s1 }
 0x310   :  { %1305 = vrot.lane.b32.xlu0 %v958_v6, %s1964_s19 }
 0x314   :  { %1423 = vrot.lane.b32.xlu0 %v958_v6, %s1965_s20 }
 0x317   :  { %1069 = vrot.lane.b32.xlu1 %v958_v6, %s1963_s3 }
 0x342   :  { %v472_v22 = vpop.xlane.xlu0 %471 }
 0x343   :  { %1919 = vrcp.f32 %v472_v22 }
 0x346   :  { %v478_v8 = vpop.permute.xlu0 %477 }
 0x347   :  { %v483_v9 = vsel %vm365_vm7, %v478_v8, 0 }
 0x348   :  { %1755 = vmatpush3.bf16.msra.mxu0 %v483_v9 }
 0x349   :  { %1766 = vmatprep.subr.bf16.mxu0 %v1959_v1 }
 0x34a   :  { %v592_v26 = vpop.xlane.xlu1 %591 }
 0x34b   :  { %1921 = vrcp.f32 %v592_v26 }
 0x34e   :  { %v716_v16 = vpop.permute.xlu1 %715 }
 0x34f   :  { %v721_v18 = vsel %vm365_vm7, %v716_v16, 0 }
 0x350   :  { %v1920_v10 = vpop.eup %1919 }
 0x351   :  { %v474_v11 = vmul.f32 %v1920_v10, %v2167_v21 }
 0x353   :  { %v475_v12 = vpack.c.bf16 %v474_v11, %v474_v11 }
 0x355   :  { %1757 = vmatmul.mubr.msk.bf16.vlgmr.msra.gmra.mxu0 %vm349_vm6, %v475_v12 }
 0x356   :  { %1767 = vmatpush3.bf16.msra.mxu0 %v602_v13  ;;  %1768 = vmatprep.mubr.msk.bf16.mxu0 %vm1960_vm0, %v1959_v1 }
 0x357   :  { %1778 = vmatprep.subr.bf16.mxu0 %v1959_v1 }
 0x358   :  { %v1922_v14 = vpop.eup %1921 }
 0x359   :  { %v594_v15 = vmul.f32 %v1922_v14, %v2171_v24 }
 0x35b   :  { %v595_v17 = vpack.c.bf16 %v594_v15, %v594_v15 }
 0x35d   :  { %1769 = vmatmul.mubr.msk.bf16.vlgmr.msra.gmra.mxu0 %vm349_vm6, %v595_v17 }
 0x35e   :  { %1779 = vmatpush3.bf16.msra.mxu0 %v721_v18  ;;  %1780 = vmatprep.mubr.msk.bf16.mxu0 %vm1960_vm0, %v1959_v1 }
 0x35f   :  { %1790 = vmatprep.subr.bf16.mxu0 %v1959_v1 }
 0x377   :  { %v711_v19 = vpop.xlane.xlu0 %710 }
 0x378   :  { %1923 = vrcp.f32 %v711_v19 }
 0x37b   :  { %v1065_v21 = vpop.xlane.xlu0 %1064 }
 0x37f   :  { %v830_v20 = vpop.xlane.xlu1 %829  ;;  %v835_v27 = vpop.permute.xlu0 %834 }
 0x380   :  { %1925 = vrcp.f32 %v830_v20  ;;  %v840_v30 = vsel %vm365_vm7, %v835_v27, 0  ;;  %v1891_v27 = vld [vmem:[%s2316_s5 + $0x20] sm:$0xff]  }
 0x381   :  { %1857 = vmatpush3.bf16.msra.mxu1 %v1891_v27 }
 0x382   :  { %1858 = vmatprep.subr.bf16.mxu1 %v1959_v1 }
 0x383   :  { %v951_v23 = vpop.xlane.xlu1 %950  ;;  %v1188_v46 = vpop.permute.xlu0 %1187 }
 0x384   :  { %1927 = vrcp.f32 %v951_v23  ;;  %v1193_v47 = vsel %vm365_vm7, %v1188_v46, 0 }
 0x385   :  { %v1924_v24 = vpop.eup %1923  ;;  %1929 = vrcp.f32 %v1065_v21 }
 0x386   :  { %v713_v25 = vmul.f32 %v1924_v24, %v2185_v48 }
 0x387   :  { %v1183_v28 = vpop.xlane.xlu1 %1182  ;;  %v1306_v51 = vpop.permute.xlu0 %1305 }
 0x388   :  { %v714_v29 = vpack.c.bf16 %v713_v25, %v713_v25  ;;  %1931 = vrcp.f32 %v1183_v28 }
 0x38a   :  { %1781 = vmatmul.mubr.msk.bf16.vlgmr.msra.gmra.mxu0 %vm349_vm6, %v714_v29 }
 0x38b   :  { %1791 = vmatpush3.bf16.msra.mxu0 %v840_v30  ;;  %v1301_v31 = vpop.xlane.xlu1 %1300  ;;  %1792 = vmatprep.mubr.msk.bf16.mxu0 %vm1960_vm0, %v1959_v1  ;;  %v1424_v59 = vpop.permute.xlu0 %1423 }
 0x38c   :  { %1802 = vmatprep.subr.bf16.mxu0 %v1959_v1  ;;  %1933 = vrcp.f32 %v1301_v31  ;;  %v1429_v63 = vsel %vm365_vm7, %v1424_v59, 0 }
 0x38d   :  { %v1926_v32 = vpop.eup %1925 }
 0x38e   :  { %v832_v33 = vmul.f32 %v1926_v32, %v2193_v56  ;;  %v1311_v56 = vsel %vm365_vm7, %v1306_v51, 0 }
 0x38f   :  { %v1419_v36 = vpop.xlane.xlu1 %1418 }
 0x390   :  { %v833_v34 = vpack.c.bf16 %v832_v33, %v832_v33  ;;  %1935 = vrcp.f32 %v1419_v36  ;;  %v1892_v33 = vld [vmem:[%s2316_s5 + $0x18] sm:$0xff]  }
 0x391   :  { %v1928_v35 = vpop.eup %1927  ;;  %1859 = vmatpush3.bf16.msra.mxu1 %v1892_v33 }
 0x392   :  { %1793 = vmatmul.mubr.msk.bf16.vlgmr.msra.gmra.mxu0 %vm349_vm6, %v833_v34  ;;  %v953_v39 = vmul.f32 %v1928_v35, %v2197_v58  ;;  %v1930_v42 = vpop.eup %1929  ;;  %v1893_v35 = vld [vmem:[%s2316_s5 + $0x10] sm:$0xff]   ;;  %1860 = vmatprep.subr.bf16.mxu1 %v1959_v1 }
 0x393   :  { %1803 = vmatpush3.bf16.msra.mxu0 %v963_v37  ;;  %1804 = vmatprep.mubr.msk.bf16.mxu0 %vm1960_vm0, %v1959_v1  ;;  %v1070_v40 = vpop.permute.xlu1 %1069  ;;  %v1067_v45 = vmul.f32 %v1930_v42, %v2189_v53 }
 0x394   :  { %1814 = vmatprep.subr.bf16.mxu0 %v1959_v1  ;;  %v954_v41 = vpack.c.bf16 %v953_v39, %v953_v39  ;;  %v1075_v44 = vsel %vm365_vm7, %v1070_v40, 0 }
 0x395   :  { %v1068_v38 = vpack.c.bf16 %v1067_v45, %v1067_v45  ;;  %v1932_v43 = vpop.eup %1931  ;;  %1861 = vmatpush3.bf16.msra.mxu1 %v1893_v35 }
 0x396   :  { %v1185_v48 = vmul.f32 %v1932_v43, %v2201_v60  ;;  %1862 = vmatprep.subr.bf16.mxu1 %v1959_v1 }
 0x398   :  { %v1186_v53 = vpack.c.bf16 %v1185_v48, %v1185_v48 }
 0x399   :  { %v1934_v54 = vpop.eup %1933 }
 0x39a   :  { %1805 = vmatmul.mubr.msk.bf16.vlgmr.msra.gmra.mxu0 %vm349_vm6, %v954_v41  ;;  %v1303_v58 = vmul.f32 %v1934_v54, %v2205_v62  ;;  %v1894_v41 = vld [vmem:[%s2316_s5 + $0x8] sm:$0xff]  }
 0x39b   :  { %1815 = vmatpush3.bf16.msra.mxu0 %v1075_v44  ;;  %1816 = vmatprep.mubr.msk.bf16.mxu0 %vm1960_vm0, %v1959_v1  ;;  %v1895_v44 = vld [vmem:[%s2316_s5] sm:$0xff]  }
 0x39c   :  { %1826 = vmatprep.subr.bf16.mxu0 %v1959_v1  ;;  %v1304_v60 = vpack.c.bf16 %v1303_v58, %v1303_v58  ;;  %1863 = vmatpush3.bf16.msra.mxu1 %v1894_v41 }
 0x39d   :  { %v1936_v61 = vpop.eup %1935  ;;  %1864 = vmatprep.subr.bf16.mxu1 %v1959_v1 }
 0x39e   :  { %v1421_v2 = vmul.f32 %v1936_v61, %v2209_v0 }
 0x3a0   :  { %v1422_v3 = vpack.c.bf16 %v1421_v2, %v1421_v2  ;;  %1865 = vmatpush3.bf16.msra.mxu1 %v1895_v44 }
 0x3a2   :  { %1817 = vmatmul.mubr.msk.bf16.vlgmr.msra.gmra.mxu0 %vm349_vm6, %v1068_v38 }
 0x3a3   :  { %1827 = vmatpush3.bf16.msra.mxu0 %v1193_v47  ;;  %1828 = vmatprep.mubr.msk.bf16.mxu0 %vm1960_vm0, %v1959_v1 }
 0x3a4   :  { %1838 = vmatprep.subr.bf16.mxu0 %v1959_v1  ;;  %v403_v49 = vpop.f32.mrf.mxu0 }
 0x3a5   :  { %v409_v50 = vpack.c.bf16 %v403_v49, %v403_v49 }
 0x3a6   :  { %v1746_v52 = vpop.f32.mrf.mxu0 }
 0x3a7   :  { %411 = vst.msk [vmem:[#allocation2] sm:$0xf] %vm410_vm8, %v409_v50 }
 0x3a8   :  { %v406_v55 = vpop.f32.mrf.mxu0 }
 0x3aa   :  { %1829 = vmatmul.mubr.msk.bf16.vlgmr.msra.gmra.mxu0 %vm349_vm6, %v1186_v53  ;;  %v1747_v57 = vpop.f32.mrf.mxu0 }
 0x3ab   :  { %1839 = vmatpush3.bf16.msra.mxu0 %v1311_v56  ;;  %1840 = vmatprep.mubr.msk.bf16.mxu0 %vm1960_vm0, %v1959_v1 }
 0x3ac   :  { %1850 = vmatprep.subr.bf16.mxu0 %v1959_v1 }
 0x3b2   :  { %1841 = vmatmul.mubr.msk.bf16.vlgmr.msra.gmra.mxu0 %vm349_vm6, %v1304_v60  ;;  %v1638_v60 = vld [vmem:[%s2317_s6] ss:$0 sm:$0xff] }
 0x3b3   :  { %1851 = vmatpush3.bf16.msra.mxu0 %v1429_v63  ;;  %1852 = vmatprep.mubr.msk.bf16.mxu0 %vm1960_vm0, %v1959_v1 }
 0x3ba   :  { %1853 = vmatmul.mubr.msk.bf16.vlgmr.msra.gmra.mxu0 %vm349_vm6, %v1422_v3 }
 0x415   :  { %v519_v4 = vpop.f32.mrf.mxu0 }
 0x416   :  { %v1647_v5 = vpack.c.bf16 %v519_v4, %v519_v4 }
 0x417   :  { %v1758_v6 = vpop.f32.mrf.mxu0 }
 0x418   :  { %529 = vrot.lane.b32.xlu0 %v1647_v5, %s1966_s4 }
 0x419   :  { %v522_v62 = vpop.f32.mrf.mxu0 }
 0x41b   :  { %v1759_v22 = vpop.f32.mrf.mxu0 }
 0x41d   :  { %v638_v7 = vpop.f32.mrf.mxu0 }
 0x41e   :  { %v1648_v8 = vpack.c.bf16 %v638_v7, %v638_v7 }
 0x41f   :  { %v1770_v9 = vpop.f32.mrf.mxu0 }
 0x420   :  { %648 = vrot.lane.b32.xlu0 %v1648_v8, %s1967_s25 }
 0x421   :  { %v641_v26 = vpop.f32.mrf.mxu0 }
 0x423   :  { %v1771_v10 = vpop.f32.mrf.mxu0 }
 0x44a   :  { %v757_v0 = vpop.f32.mrf.mxu0 }
 0x44b   :  { %v1649_v11 = vpack.c.bf16 %v757_v0, %v757_v0 }
 0x44c   :  { %v1782_v12 = vpop.f32.mrf.mxu0 }
 0x44d   :  { %767 = vrot.lane.b32.xlu0 %v1649_v11, %s1968_s26 }
 0x44e   :  { %v760_v13 = vpop.f32.mrf.mxu0 }
 0x450   :  { %v1783_v14 = vpop.f32.mrf.mxu0 }
 0x452   :  { %v876_v15 = vpop.f32.mrf.mxu0 }
 0x453   :  { %v1650_v16 = vpack.c.bf16 %v876_v15, %v876_v15 }
 0x454   :  { %v1794_v17 = vpop.f32.mrf.mxu0 }
 0x455   :  { %886 = vrot.lane.b32.xlu0 %v1650_v16, %s1965_s20 }
 0x456   :  { %v879_v18 = vpop.f32.mrf.mxu0 }
 0x458   :  { %v1795_v19 = vpop.f32.mrf.mxu0 }
 0x45a   :  { %v999_v20 = vpop.f32.mrf.mxu0 }
 0x45b   :  { %v1005_v21 = vpack.c.bf16 %v999_v20, %v999_v20 }
 0x45c   :  { %v1806_v23 = vpop.f32.mrf.mxu0 }
 0x45d   :  { %1006 = vst.msk [vmem:[#allocation2 + $0x4] sm:$0xf] %vm410_vm8, %v1005_v21 }
 0x45e   :  { %v1002_v24 = vpop.f32.mrf.mxu0 }
 0x460   :  { %v1807_v25 = vpop.f32.mrf.mxu0 }
 0x462   :  { %v1111_v28 = vpop.f32.mrf.mxu0 }
 0x463   :  { %v1651_v29 = vpack.c.bf16 %v1111_v28, %v1111_v28 }
 0x464   :  { %v1818_v30 = vpop.f32.mrf.mxu0 }
 0x465   :  { %1121 = vrot.lane.b32.xlu1 %v1651_v29, %s1966_s4 }
 0x466   :  { %v1114_v31 = vpop.f32.mrf.mxu0 }
 0x468   :  { %v1819_v32 = vpop.f32.mrf.mxu0 }
 0x46a   :  { %v1229_v34 = vpop.f32.mrf.mxu0 }
 0x46b   :  { %v1652_v36 = vpack.c.bf16 %v1229_v34, %v1229_v34 }
 0x46c   :  { %v1830_v37 = vpop.f32.mrf.mxu0 }
 0x46d   :  { %1239 = vrot.lane.b32.xlu1 %v1652_v36, %s1967_s25 }
 0x46e   :  { %v1232_v39 = vpop.f32.mrf.mxu0 }
 0x470   :  { %v1831_v40 = vpop.f32.mrf.mxu0 }
 0x472   :  { %v1347_v42 = vpop.f32.mrf.mxu0 }
 0x473   :  { %v1653_v45 = vpack.c.bf16 %v1347_v42, %v1347_v42 }
 0x474   :  { %v1842_v46 = vpop.f32.mrf.mxu0 }
 0x475   :  { %1357 = vrot.lane.b32.xlu1 %v1653_v45, %s1968_s26 }
 0x476   :  { %v1350_v38 = vpop.f32.mrf.mxu0 }
 0x478   :  { %v1843_v43 = vpop.f32.mrf.mxu0 }
 0x47a   :  { %v1465_v47 = vpop.f32.mrf.mxu0 }
 0x47b   :  { %v1654_v48 = vpack.c.bf16 %v1465_v47, %v1465_v47 }
 0x47c   :  { %v1854_v49 = vpop.f32.mrf.mxu0 }
 0x47d   :  { %1475 = vrot.lane.b32.xlu1 %v1654_v48, %s1965_s20 }
 0x47e   :  { %v1468_v50 = vpop.f32.mrf.mxu0 }
 0x480   :  { %v1855_v51 = vpop.f32.mrf.mxu0 }
 0x48a   :  { %v530_v52 = vpop.permute.xlu0 %529 }
 0x48b   :  { %533 = vst.msk [vmem:[#allocation2] sm:$0xf] %vm532_vm9, %v530_v52 }
 0x492   :  { %v649_v53 = vpop.permute.xlu0 %648 }
 0x493   :  { %652 = vst.msk [vmem:[#allocation2] sm:$0xf] %vm651_vm10, %v649_v53 }
 0x4bf   :  { %v768_v1 = vpop.permute.xlu0 %767 }
 0x4c0   :  { %771 = vst.msk [vmem:[#allocation2] sm:$0xf] %vm770_vm11, %v768_v1 }
 0x4c7   :  { %v887_v54 = vpop.permute.xlu0 %886 }
 0x4c8   :  { %890 = vst.msk [vmem:[#allocation2] sm:$0xf] %vm889_vm12, %v887_v54 }
 0x4d7   :  { %v1122_v55 = vpop.permute.xlu1 %1121 }
 0x4d8   :  { %1124 = vst.msk [vmem:[#allocation2 + $0x4] sm:$0xf] %vm532_vm9, %v1122_v55 }
 0x4df   :  { %v1240_v56 = vpop.permute.xlu1 %1239 }
 0x4e0   :  { %1242 = vst.msk [vmem:[#allocation2 + $0x4] sm:$0xf] %vm651_vm10, %v1240_v56 }
 0x4e7   :  { %v1358_v57 = vpop.permute.xlu1 %1357 }
 0x4e8   :  { %1360 = vst.msk [vmem:[#allocation2 + $0x4] sm:$0xf] %vm770_vm11, %v1358_v57 }
 0x4ef   :  { %v1476_v58 = vpop.permute.xlu1 %1475 }
 0x4f0   :  { %1478 = vst.msk [vmem:[#allocation2 + $0x4] sm:$0xf] %vm889_vm12, %v1476_v58 }
 0x4f7   :  { %v1896_v59 = vld [vmem:[#allocation2] sm:$0xff]  }
 0x4f8   :  { %1867 = vmatmul.mubr.msk.bf16.vlgmr.msra.gmra.mxu1 %vm1533_vm13, %v1896_v59 }
 0x5b8   :  { %v1571_v61 = vpop.f32.mrf.mxu1 }
 0x5b9   :  { %v1572_v63 = vadd.f32 %v1638_v60, %v1571_v61 }
 0x5ba   :  { %v1868_v2 = vpop.f32.mrf.mxu1 }
 0x5bb   :  { %1578 = vst.msk [vmem:[#allocation3] sm:$0xff] %vm93_vm2, %v1572_v63 }
 0x5bc   :  { %v1574_v3 = vpop.f32.mrf.mxu1 }
 0x5bd   :  { %v1575_v4 = vadd.f32 %v1638_v60, %v1574_v3 }
 0x5be   :  { %v1869_v5 = vpop.f32.mrf.mxu1 }
 0x5bf   :  { %1579 = vst.msk [vmem:[#allocation3 + $0x8] sm:$0xff] %vm93_vm2, %v1575_v4 }
 0x5c0   :  { %1948 = shalt.err (!%p1945_p4)
}
 0x5c1   :  { %s1970_s6 = smov 128   ;;  %s1971_s16 = smov 8  }
 0x5c2   :  { %1591 = dma.vmem_to_hbm [thread:$0]  %s1586_s14, 256, %s2318_s7, [#allocation4], %s1970_s6, %s1970_s6, %s1971_s16  }
 0x5c3   :  { %1957 = dma.done.wait [#allocation4], 256  }
 0x5c4   :  { %1958 = vsyncadd [#allocation4], 4294967040 }
 0x5c5   :  { %1595 = vsyncpa [#allocation4], 1 }

</bundles_post_ra>
